<compile_context>
chip_gen: v7x
topology: tpu7x:2x2x1
jax: 0.10.0
libtpu: 0.0.40
codegen_flags: <defaults>
</compile_context>

<pallas_src>
import functools

import jax
import jax.numpy as jnp
from jax.experimental import pallas as pl
from jax.experimental.pallas import tpu as pltpu


def _round_up(a: int, b: int) -> int:
    return (a + b - 1) // b * b


def _cdiv(a: int, b: int) -> int:
    return (a + b - 1) // b


def _pick_row_tile(H: int, Wq: int, max_rows: int = 256) -> int:
    """Largest TH dividing H with TH*Wq a multiple of 8 and TH*Wq <= max_rows."""
    best = None
    for th in range(1, H + 1):
        if H % th:
            continue
        m = th * Wq
        if m % 8 == 0 and m <= max_rows:
            best = th
    if best is not None:
        return best
    for th in range(1, H + 1):                 # any 8-aligned divisor
        if H % th == 0 and (th * Wq) % 8 == 0:
            return th
    return H                                    # whole image: full-dim block, legal


# ---------------------------------------------------------------------------
# Pallas kernel: one (batch, row-tile) step of dilated 3x3 conv + bias + ReLU
# ---------------------------------------------------------------------------
def _cbr_kernel(x_ref, w_ref, b_ref, o_ref, *, M, Wq, d, Lw):
    # x_ref: (1, Hp*Wq, Cpi)  bf16  flattened, spatially padded NHWC image
    # w_ref: (9, Cpi, Cpo)    bf16  BN-scale-folded taps, t = 3*ky + kx
    # b_ref: (1, Cpo)         f32   folded BN bias
    # o_ref: (1, M, Cpo)      f32   flat output rows of this tile (M = TH*Wq)
    r = pl.program_id(1)
    row0 = r * M
    if M % 8 == 0:
        row0 = pl.multiple_of(row0, 8)

    # One covering-window load per tile (8-aligned dynamic sublane start);
    # all 9 taps reuse it via static sublane-offset views.
    win = x_ref[0, pl.ds(row0, Lw), :]                      # (Lw, Cpi) bf16

    Cpo = o_ref.shape[-1]
    acc = jnp.zeros((M, Cpo), jnp.float32)
    for t in range(9):                                      # static unroll, 3x3 taps
        ky, kx = divmod(t, 3)
        off = (ky * Wq + kx) * d                            # static flat shift
        acc = acc + jnp.dot(win[off:off + M, :], w_ref[t],
                            preferred_element_type=jnp.float32)

    y = jnp.maximum(acc + b_ref[...], 0.0)                  # bias + ReLU
    o_ref[...] = y.reshape(1, M, Cpo).astype(o_ref.dtype)


# ---------------------------------------------------------------------------
# Wrapper: NCHW in / NCHW out, matching the PyTorch ConvBNReLU forward
# ---------------------------------------------------------------------------
@functools.partial(jax.jit, static_argnames=("dilation",))
def _conv_bn_relu_impl(x_nchw, w, gamma, beta, mean, var, *, dilation):
    d = dilation
    eps = 1e-5

    N, Cin, H, W = x_nchw.shape
    Cout = w.shape[0]
    Cpi = _round_up(Cin, 128)            # lane-dense channel padding
    Cpo = _round_up(Cout, 128)

    Wq = W + 2 * d                       # padded width
    TH = _pick_row_tile(H, Wq)           # output rows per grid step
    R = H // TH
    M = TH * Wq                          # flat output rows per tile
    Lw = _round_up(M + 2 * d * Wq + 2 * d, 8)         # covering window length
    Hp = max(H + 2 * d, (H - TH) + _cdiv(Lw, Wq))     # padded rows (incl. slack)
    pad_top, pad_bot = d, Hp - H - d

    # Fold BN (inference) into weights / bias.
    scale = gamma / jnp.sqrt(var + eps)                               # (Cout,)
    bias = beta - mean * scale                                        # (Cout,)
    wf = w.astype(jnp.float32) * scale[:, None, None, None]           # scale folded
    w9 = jnp.transpose(wf, (2, 3, 1, 0)).reshape(9, Cin, Cout)        # (9,Cin,Cout)
    w9 = jnp.pad(w9, ((0, 0), (0, Cpi - Cin), (0, Cpo - Cout))).astype(jnp.bfloat16)
    b2 = jnp.pad(bias, (0, Cpo - Cout)).reshape(1, Cpo).astype(jnp.float32)

    # NCHW -> NHWC, pad channels to Cpi, pad spatially, cast to bf16, flatten rows.
    x = jnp.transpose(x_nchw, (0, 2, 3, 1)).astype(jnp.float32)
    x = jnp.pad(x, ((0, 0), (pad_top, pad_bot), (d, d), (0, Cpi - Cin)))
    xf = x.astype(jnp.bfloat16).reshape(N, Hp * Wq, Cpi)

    kernel = functools.partial(_cbr_kernel, M=M, Wq=Wq, d=d, Lw=Lw)
    flops = 2 * N * R * M * Cpi * Cpo * 9
    bytes_accessed = (N * Hp * Wq * Cpi * 2          # image (bf16)
                      + 9 * Cpi * Cpo * 2            # weights (bf16)
                      + Cpo * 4                      # bias
                      + N * H * Wq * Cpo * 4)        # output (f32)

    out_flat = pl.pallas_call(
        kernel,
        out_shape=jax.ShapeDtypeStruct((N, H * Wq, Cpo), jnp.float32),
        grid=(N, R),
        in_specs=[
            pl.BlockSpec((1, Hp * Wq, Cpi), lambda n, r: (n, 0, 0)),
            pl.BlockSpec((9, Cpi, Cpo), lambda n, r: (0, 0, 0)),
            pl.BlockSpec((1, Cpo), lambda n, r: (0, 0)),
        ],
        out_specs=pl.BlockSpec((1, M, Cpo), lambda n, r: (n, r, 0)),
        compiler_params=pltpu.CompilerParams(
            dimension_semantics=("parallel", "parallel"),
            vmem_limit_bytes=64 * 1024 * 1024,
        ),
        cost_estimate=pl.CostEstimate(flops=flops, transcendentals=0,
                                      bytes_accessed=bytes_accessed),
    )(xf, w9, b2)

    # Drop flat-shift garbage columns and padded channels; back to NCHW.
    out = out_flat.reshape(N, H, Wq, Cpo)[:, :, :W, :Cout]
    return jnp.transpose(out, (0, 3, 1, 2))


def conv_bn_relu(x_nchw, params):
    return _conv_bn_relu_impl(
        x_nchw, params["w"], params["gamma"], params["beta"],
        params["mean"], params["var"], dilation=int(params["dilation"]))


# ---------------------------------------------------------------------------
# Deterministic parameters + pure-JAX reference for verification
# ---------------------------------------------------------------------------
def init_conv_bn_relu_params(key, in_ch, out_ch, dilation=1):
    kw, kg, kb, km, kv = jax.random.split(key, 5)
    return {
        "w": 0.1 * jax.random.normal(kw, (out_ch, in_ch, 3, 3), jnp.float32),
        "gamma": jax.random.uniform(kg, (out_ch,), jnp.float32, 0.5, 1.5),
        "beta": 0.1 * jax.random.normal(kb, (out_ch,), jnp.float32),
        "mean": 0.1 * jax.random.normal(km, (out_ch,), jnp.float32),
        "var": jax.random.uniform(kv, (out_ch,), jnp.float32, 0.5, 1.5),
        "dilation": dilation,
    }


def conv_bn_relu_reference(x_nchw, params):
    d = int(params["dilation"])
    eps = 1e-5
    y = jax.lax.conv_general_dilated(
        x_nchw.astype(jnp.float32), params["w"].astype(jnp.float32),
        window_strides=(1, 1), padding=((d, d), (d, d)), rhs_dilation=(d, d),
        dimension_numbers=("NCHW", "OIHW", "NCHW"))
    scale = params["gamma"] / jnp.sqrt(params["var"] + eps)
    bias = params["beta"] - params["mean"] * scale
    y = y * scale[None, :, None, None] + bias[None, :, None, None]
    return jnp.maximum(y, 0.0)


if __name__ == "__main__":
    key = jax.random.PRNGKey(0)
    k_x, k_p1, k_p2 = jax.random.split(key, 3)

    # small shapes consistent with the module: batch=2, in_ch=4, out_ch=8, 16x16
    x = jax.random.normal(k_x, (2, 4, 16, 16), jnp.float32)

    for dil, kp in ((1, k_p1), (2, k_p2)):
        params = init_conv_bn_relu_params(kp, in_ch=4, out_ch=8, dilation=dil)
        out = conv_bn_relu(x, params)
        jax.block_until_ready(out)
        assert out.shape == (2, 8, 16, 16)
        ref = conv_bn_relu_reference(x, params)
        err = float(jnp.max(jnp.abs(out - ref)))
        assert err < 0.1, f"max abs error {err} at dilation={dil}"

    print("KERNEL_OK")
</pallas_src>

<mosaic_0001>
module attributes {stable_mosaic.version = 11 : i64} {
  func.func @_cbr_kernel(%arg0: i32, %arg1: i32, %arg2: memref<1x342x128xbf16, #tpu.memory_space<vmem>>, %arg3: memref<9x128x128xbf16, #tpu.memory_space<vmem>>, %arg4: memref<1x128xf32, #tpu.memory_space<vmem>>, %arg5: memref<1x144x128xf32, #tpu.memory_space<vmem>>) attributes {dimension_semantics = [#tpu.dimension_semantics<parallel>, #tpu.dimension_semantics<parallel>], iteration_bounds = array<i64: 2, 2>, scalar_prefetch = 0 : i64, scratch_operands = 0 : i64, tpu.core_type = #tpu.core_type<tc>, window_params = [{transform_indices = @transform_0, window_bounds = array<i64: 1, 342, 128>}, {pipeline_mode = #tpu.pipeline_mode<synchronous>, transform_indices = @transform_1, window_bounds = array<i64: 9, 128, 128>}, {pipeline_mode = #tpu.pipeline_mode<synchronous>, transform_indices = @transform_2, window_bounds = array<i64: 1, 128>}, {transform_indices = @transform_3, window_bounds = array<i64: 1, 144, 128>}]} {
    %c144_i32 = arith.constant 144 : i32
    %0 = arith.muli %arg1, %c144_i32 : i32
    %1 = tpu.assume_multiple %0, 8 : i32
    %c0 = arith.constant 0 : index
    %2 = arith.index_cast %1 : i32 to index
    %c0_0 = arith.constant 0 : index
    %3 = vector.load %arg2[%c0, %2, %c0_0] : memref<1x342x128xbf16, #tpu.memory_space<vmem>>, vector<1x184x128xbf16>
    %4 = vector.shape_cast %3 : vector<1x184x128xbf16> to vector<184x128xbf16>
    %cst = arith.constant 0.000000e+00 : f32
    %5 = vector.broadcast %cst : f32 to vector<144x128xf32>
    %6 = vector.extract_strided_slice %4 {offsets = [0, 0], sizes = [144, 128], strides = [1, 1]} : vector<184x128xbf16> to vector<144x128xbf16>
    %c0_1 = arith.constant 0 : index
    %c0_2 = arith.constant 0 : index
    %c0_3 = arith.constant 0 : index
    %7 = vector.load %arg3[%c0_1, %c0_2, %c0_3] : memref<9x128x128xbf16, #tpu.memory_space<vmem>>, vector<1x128x128xbf16>
    %8 = vector.shape_cast %7 : vector<1x128x128xbf16> to vector<128x128xbf16>
    %cst_4 = arith.constant dense<0.000000e+00> : vector<144x128xf32>
    %9 = tpu.matmul %6, %8, %cst_4 {dimension_numbers = #tpu.dot_dimension_numbers<[1], [0], [0], [1], [0, 0, 1, 1], [], []>} : vector<144x128xbf16>, vector<128x128xbf16>, vector<144x128xf32> -> vector<144x128xf32>
    %10 = arith.addf %5, %9 : vector<144x128xf32>
    %11 = vector.extract_strided_slice %4 {offsets = [1, 0], sizes = [144, 128], strides = [1, 1]} : vector<184x128xbf16> to vector<144x128xbf16>
    %c1 = arith.constant 1 : index
    %c0_5 = arith.constant 0 : index
    %c0_6 = arith.constant 0 : index
    %12 = vector.load %arg3[%c1, %c0_5, %c0_6] : memref<9x128x128xbf16, #tpu.memory_space<vmem>>, vector<1x128x128xbf16>
    %13 = vector.shape_cast %12 : vector<1x128x128xbf16> to vector<128x128xbf16>
    %cst_7 = arith.constant dense<0.000000e+00> : vector<144x128xf32>
    %14 = tpu.matmul %11, %13, %cst_7 {dimension_numbers = #tpu.dot_dimension_numbers<[1], [0], [0], [1], [0, 0, 1, 1], [], []>} : vector<144x128xbf16>, vector<128x128xbf16>, vector<144x128xf32> -> vector<144x128xf32>
    %15 = arith.addf %10, %14 : vector<144x128xf32>
    %16 = vector.extract_strided_slice %4 {offsets = [2, 0], sizes = [144, 128], strides = [1, 1]} : vector<184x128xbf16> to vector<144x128xbf16>
    %c2 = arith.constant 2 : index
    %c0_8 = arith.constant 0 : index
    %c0_9 = arith.constant 0 : index
    %17 = vector.load %arg3[%c2, %c0_8, %c0_9] : memref<9x128x128xbf16, #tpu.memory_space<vmem>>, vector<1x128x128xbf16>
    %18 = vector.shape_cast %17 : vector<1x128x128xbf16> to vector<128x128xbf16>
    %cst_10 = arith.constant dense<0.000000e+00> : vector<144x128xf32>
    %19 = tpu.matmul %16, %18, %cst_10 {dimension_numbers = #tpu.dot_dimension_numbers<[1], [0], [0], [1], [0, 0, 1, 1], [], []>} : vector<144x128xbf16>, vector<128x128xbf16>, vector<144x128xf32> -> vector<144x128xf32>
    %20 = arith.addf %15, %19 : vector<144x128xf32>
    %21 = vector.extract_strided_slice %4 {offsets = [18, 0], sizes = [144, 128], strides = [1, 1]} : vector<184x128xbf16> to vector<144x128xbf16>
    %c3 = arith.constant 3 : index
    %c0_11 = arith.constant 0 : index
    %c0_12 = arith.constant 0 : index
    %22 = vector.load %arg3[%c3, %c0_11, %c0_12] : memref<9x128x128xbf16, #tpu.memory_space<vmem>>, vector<1x128x128xbf16>
    %23 = vector.shape_cast %22 : vector<1x128x128xbf16> to vector<128x128xbf16>
    %cst_13 = arith.constant dense<0.000000e+00> : vector<144x128xf32>
    %24 = tpu.matmul %21, %23, %cst_13 {dimension_numbers = #tpu.dot_dimension_numbers<[1], [0], [0], [1], [0, 0, 1, 1], [], []>} : vector<144x128xbf16>, vector<128x128xbf16>, vector<144x128xf32> -> vector<144x128xf32>
    %25 = arith.addf %20, %24 : vector<144x128xf32>
    %26 = vector.extract_strided_slice %4 {offsets = [19, 0], sizes = [144, 128], strides = [1, 1]} : vector<184x128xbf16> to vector<144x128xbf16>
    %c4 = arith.constant 4 : index
    %c0_14 = arith.constant 0 : index
    %c0_15 = arith.constant 0 : index
    %27 = vector.load %arg3[%c4, %c0_14, %c0_15] : memref<9x128x128xbf16, #tpu.memory_space<vmem>>, vector<1x128x128xbf16>
    %28 = vector.shape_cast %27 : vector<1x128x128xbf16> to vector<128x128xbf16>
    %cst_16 = arith.constant dense<0.000000e+00> : vector<144x128xf32>
    %29 = tpu.matmul %26, %28, %cst_16 {dimension_numbers = #tpu.dot_dimension_numbers<[1], [0], [0], [1], [0, 0, 1, 1], [], []>} : vector<144x128xbf16>, vector<128x128xbf16>, vector<144x128xf32> -> vector<144x128xf32>
    %30 = arith.addf %25, %29 : vector<144x128xf32>
    %31 = vector.extract_strided_slice %4 {offsets = [20, 0], sizes = [144, 128], strides = [1, 1]} : vector<184x128xbf16> to vector<144x128xbf16>
    %c5 = arith.constant 5 : index
    %c0_17 = arith.constant 0 : index
    %c0_18 = arith.constant 0 : index
    %32 = vector.load %arg3[%c5, %c0_17, %c0_18] : memref<9x128x128xbf16, #tpu.memory_space<vmem>>, vector<1x128x128xbf16>
    %33 = vector.shape_cast %32 : vector<1x128x128xbf16> to vector<128x128xbf16>
    %cst_19 = arith.constant dense<0.000000e+00> : vector<144x128xf32>
    %34 = tpu.matmul %31, %33, %cst_19 {dimension_numbers = #tpu.dot_dimension_numbers<[1], [0], [0], [1], [0, 0, 1, 1], [], []>} : vector<144x128xbf16>, vector<128x128xbf16>, vector<144x128xf32> -> vector<144x128xf32>
    %35 = arith.addf %30, %34 : vector<144x128xf32>
    %36 = vector.extract_strided_slice %4 {offsets = [36, 0], sizes = [144, 128], strides = [1, 1]} : vector<184x128xbf16> to vector<144x128xbf16>
    %c6 = arith.constant 6 : index
    %c0_20 = arith.constant 0 : index
    %c0_21 = arith.constant 0 : index
    %37 = vector.load %arg3[%c6, %c0_20, %c0_21] : memref<9x128x128xbf16, #tpu.memory_space<vmem>>, vector<1x128x128xbf16>
    %38 = vector.shape_cast %37 : vector<1x128x128xbf16> to vector<128x128xbf16>
    %cst_22 = arith.constant dense<0.000000e+00> : vector<144x128xf32>
    %39 = tpu.matmul %36, %38, %cst_22 {dimension_numbers = #tpu.dot_dimension_numbers<[1], [0], [0], [1], [0, 0, 1, 1], [], []>} : vector<144x128xbf16>, vector<128x128xbf16>, vector<144x128xf32> -> vector<144x128xf32>
    %40 = arith.addf %35, %39 : vector<144x128xf32>
    %41 = vector.extract_strided_slice %4 {offsets = [37, 0], sizes = [144, 128], strides = [1, 1]} : vector<184x128xbf16> to vector<144x128xbf16>
    %c7 = arith.constant 7 : index
    %c0_23 = arith.constant 0 : index
    %c0_24 = arith.constant 0 : index
    %42 = vector.load %arg3[%c7, %c0_23, %c0_24] : memref<9x128x128xbf16, #tpu.memory_space<vmem>>, vector<1x128x128xbf16>
    %43 = vector.shape_cast %42 : vector<1x128x128xbf16> to vector<128x128xbf16>
    %cst_25 = arith.constant dense<0.000000e+00> : vector<144x128xf32>
    %44 = tpu.matmul %41, %43, %cst_25 {dimension_numbers = #tpu.dot_dimension_numbers<[1], [0], [0], [1], [0, 0, 1, 1], [], []>} : vector<144x128xbf16>, vector<128x128xbf16>, vector<144x128xf32> -> vector<144x128xf32>
    %45 = arith.addf %40, %44 : vector<144x128xf32>
    %46 = vector.extract_strided_slice %4 {offsets = [38, 0], sizes = [144, 128], strides = [1, 1]} : vector<184x128xbf16> to vector<144x128xbf16>
    %c8 = arith.constant 8 : index
    %c0_26 = arith.constant 0 : index
    %c0_27 = arith.constant 0 : index
    %47 = vector.load %arg3[%c8, %c0_26, %c0_27] : memref<9x128x128xbf16, #tpu.memory_space<vmem>>, vector<1x128x128xbf16>
    %48 = vector.shape_cast %47 : vector<1x128x128xbf16> to vector<128x128xbf16>
    %cst_28 = arith.constant dense<0.000000e+00> : vector<144x128xf32>
    %49 = tpu.matmul %46, %48, %cst_28 {dimension_numbers = #tpu.dot_dimension_numbers<[1], [0], [0], [1], [0, 0, 1, 1], [], []>} : vector<144x128xbf16>, vector<128x128xbf16>, vector<144x128xf32> -> vector<144x128xf32>
    %50 = arith.addf %45, %49 : vector<144x128xf32>
    %c0_29 = arith.constant 0 : index
    %c0_30 = arith.constant 0 : index
    %51 = vector.load %arg4[%c0_29, %c0_30] : memref<1x128xf32, #tpu.memory_space<vmem>>, vector<1x128xf32>
    %52 = vector.broadcast %51 : vector<1x128xf32> to vector<144x128xf32>
    %53 = arith.addf %50, %52 : vector<144x128xf32>
    %cst_31 = arith.constant 0.000000e+00 : f32
    %54 = vector.broadcast %cst_31 : f32 to vector<144x128xf32>
    %55 = arith.maximumf %53, %54 : vector<144x128xf32>
    %56 = vector.shape_cast %55 : vector<144x128xf32> to vector<1x144x128xf32>
    %c0_32 = arith.constant 0 : index
    %c0_33 = arith.constant 0 : index
    %c0_34 = arith.constant 0 : index
    %57 = vector.load %arg5[%c0_32, %c0_33, %c0_34] : memref<1x144x128xf32, #tpu.memory_space<vmem>>, vector<1x144x128xf32>
    tpu.vector_store %arg5[%c0_32, %c0_33, %c0_34], %56 {strides = array<i32>} : memref<1x144x128xf32, #tpu.memory_space<vmem>>, vector<1x144x128xf32>,
    return
  }
  func.func @transform_0(%arg0: i32, %arg1: i32) -> (i32, i32, i32) {
    %c0_i32 = arith.constant 0 : i32
    %c0_i32_0 = arith.constant 0 : i32
    %c0_i32_1 = arith.constant 0 : i32
    return %arg0, %c0_i32, %c0_i32_0 : i32, i32, i32
  }
  func.func @transform_1(%arg0: i32, %arg1: i32) -> (i32, i32, i32) {
    %c0_i32 = arith.constant 0 : i32
    %c0_i32_0 = arith.constant 0 : i32
    %c0_i32_1 = arith.constant 0 : i32
    %c0_i32_2 = arith.constant 0 : i32
    return %c0_i32, %c0_i32_0, %c0_i32_1 : i32, i32, i32
  }
  func.func @transform_2(%arg0: i32, %arg1: i32) -> (i32, i32) {
    %c0_i32 = arith.constant 0 : i32
    %c0_i32_0 = arith.constant 0 : i32
    %c0_i32_1 = arith.constant 0 : i32
    return %c0_i32, %c0_i32_0 : i32, i32
  }
  func.func @transform_3(%arg0: i32, %arg1: i32) -> (i32, i32, i32) {
    %c0_i32 = arith.constant 0 : i32
    %c0_i32_0 = arith.constant 0 : i32
    return %arg0, %arg1, %c0_i32 : i32, i32, i32
  }
}

</mosaic_0001>

<bundles_post_ra>
// kernel: _conv_bn_relu_impl.1
= control target key start
LH: loop header
LB: loop body
LE: loop exit
PB: predicated region body
PF: predicated region fallthrough
CT: control target
= control target key end

     0   :  { %s4811_s0 = inlined_call_operand.hbm [shape: bf16[2,342,128], index: 0, kind: input, shape index: {}]   ;;  %s4812_s1 = inlined_call_operand.hbm [shape: bf16[9,128,128], index: 1, kind: input, shape index: {}]   ;;  %s4813_s2 = inlined_call_operand.hbm [shape: f32[1,128], index: 2, kind: input, shape index: {}]   ;;  %s4814_s3 = inlined_call_operand.hbm [shape: f32[2,288,128], index: 3, kind: output, shape index: {}]  }
   0x1   :  { %4826 = sst [smem:[#allocation16_spill]] %s4812_s1 }
   0x2   :  { %4827 = sst [smem:[#allocation17_spill]] %s4813_s2 }
   0x3   :  { %8 = vsyncpa [#allocation3], 0 }
   0x4   :  { %10 = vsyncpa [#allocation3 + $0x1], 0 }
   0x5   :  { %11 = vsyncpa [#allocation6], 0 }
   0x6   :  { %12 = vsyncpa [#allocation4], 0 }
   0x7   :  { %14 = vsyncpa [#allocation4 + $0x1], 0  ;;  %s3682_s12 = smov 0   ;;  %s3684_s13 = smov 0  }
   0x8   :  { %s3686_s14 = smov 0   ;;  %s3688_s15 = smov 0  }
   0x9   :  { %s3690_s16 = smov 0   ;;  %s3692_s17 = smov 0  }
   0xa   :  { %s3694_s18 = smov 0   ;;  %s3696_s19 = smov 0  }
   0xb   :  { %s3698_s20 = smov 0   ;;  %s3700_s21 = smov 0  }
   0xc   :  { %s3702_s22 = smov 0  }
   0xd LB: > { %4828 = sst [smem:[#allocation12_spill]] %s3610_s12  ;;  %s2472_s23 = sadd.s32 4294967295, %s3650_s22   ;;  %s3650_s22 = sphi %s3702_s22, %s20_s22   ;;  %s3646_s21 = sphi %s3700_s21, %s4862_s21   ;;  %s3642_s20 = sphi %s3698_s20, %s4853_s20   ;;  %s3638_s19 = sphi %s3696_s19, %s4861_s19   ;;  %s3634_s18 = sphi %s3694_s18, %s4852_s18   ;;  %s3630_s17 = sphi %s3692_s17, %s4860_s17   ;;  %s3626_s16 = sphi %s3690_s16, %s4859_s16   ;;  %s3622_s15 = sphi %s3688_s15, %s4858_s15   ;;  %s3618_s14 = sphi %s3686_s14, %s4857_s14   ;;  %s3614_s13 = sphi %s3684_s13, %s4856_s13   ;;  %s3610_s12 = sphi %s3682_s12, %s4855_s12  }
   0xe   : > { %4829 = sst [smem:[#allocation13_spill]] %s3642_s20  ;;  %s2473_s24 = sadd.s32 4294967294, %s3650_s22  }
   0xf   : > { %p52_p0 = scmp.ne.s32.totalorder %s3626_s16, %s3622_s15  ;;  %p3738_p1 = scmp.eq.s32.totalorder %s2472_s23, 0 }
  0x10   : > { %p119_p2 = scmp.ne.s32.totalorder %s3618_s14, %s3614_s13  ;;  %p120_p4 = scmp.eq.s32.totalorder %s2472_s23, 3 }
  0x11   : > { %s4830_s25 = scalar_select %p3738_p1, 1, 0 }
  0x12   : > { %p3747_p3 = por %p3738_p1, %p52_p0  ;;  %p125_p5 = scmp.ne.s32.totalorder %s3614_s13, %s3610_s12 }
  0x13   : > { %p126_p6 = scmp.eq.s32.totalorder %s2473_s24, 3  ;;  %p3753_p7 = por %p120_p4, %p119_p2 }
  0x14   : > { %s4831_s27 = scalar_select %p3747_p3, 1, 0 }
  0x15   : > { %s4832_s28 = scalar_select %p3753_p7, 1, 0 }
  0x16   : > { %p2474_p8 = scmp.ge.s32.totalorder %s3650_s22, 1  ;;  %p3758_p9 = por %p126_p6, %p125_p5 }
  0x17   : > { %p133_p10 = scmp.lt.s32.totalorder %s3650_s22, 5  ;;  %s3652_s4 = smov [#allocation5]  }
  0x18   : > { %s4833_s29 = scalar_select %p3758_p9, 1, 0 }
  0x19   : > { %p3763_p11 = pnand %p2474_p8, %p133_p10  ;;  %s145_s5 = sshll.u32 %s3652_s4, 4  ;;  %s146_s5 = int_to_ptr.vmem [resolvable:$true] %s145_s5 }
  0x1a   : > { %4834 = sst [smem:[#allocation14_spill]] %s4833_s29  ;;  %s3653_s7 = smov [#allocation7]  }
  0x1b   : > { %s4835_s30 = scalar_select %p3763_p11, 1, 0 }
  0x1c   : > { %p3227_p12 = pneg %p3763_p11  ;;  %s159_s8 = sshll.u32 %s3653_s7, 4  ;;  %s3775_s8 = int_to_ptr.vmem [resolvable:$true] %s159_s8 }
  0x1d   : > { %s4837_s1 = sld [smem:[#allocation16_spill]] }
  0x1e   : > { %p3771_p13 = pnand %p3227_p12, %p3738_p1 }
  0x20   : > { %p3440_p2 = pneg %p3771_p13 }
  0x23   : > { %s3438_s11 = scalar_lea.hbm %s4837_s1, 9216 }
  0x24   : > { %p3439_p0 = scmp.ne.s32.totalorder %s4837_s1, %s3438_s11  ;;  %p3445_p6 = scmp.lt.u32.totalorder %s3438_s11, %s4837_s1 }
  0x26   : > { %p3441_p4 = pnand %p3440_p2, %p3439_p0 }
  0x28   : > { %p3442_p5 = pneg %p3441_p4 }
  0x2a   : > { %p3447_p8 = pnand %p3445_p6, %p3442_p5 }
  0x2c   : > { %3450 = shalt.err (!%p3447_p8)
}
  0x2d   : > { %s3451_s7 = scalar_lea.vmem %s146_s5, 9216  ;;  %p3459_p7 = scmp.lt.s32.totalorder %s146_s5, %s146_s5 }
  0x2e   : > { %p3452_p10 = scmp.ne.s32.totalorder %s146_s5, %s3451_s7  ;;  %p3460_p1 = scmp.lt.s32.totalorder %s3451_s7, %s3451_s7 }
  0x30   : > { %p3454_p12 = pnand %p3452_p10, %p3440_p2  ;;  %p3461_p3 = por %p3460_p1, %p3459_p7 }
  0x32   : > { %p3455_p9 = pneg %p3454_p12 }
  0x34   : > { %p3462_p11 = pnand %p3461_p3, %p3455_p9 }
  0x36   : > { %3465 = shalt.err (!%p3462_p11)
}
  0x37   : > { %s4822_s9 = smov 64   ;;  %s4823_s10 = smov 4  }
  0x38   : > { %3230 = dma.hbm_to_vmem [thread:$0]  (!%p3771_p13), %s4837_s1, 9216, %s146_s5, [#allocation6], %s4822_s9, %s4822_s9, %s4823_s10  }
  0x39   : > { %s4838_s2 = sld [smem:[#allocation17_spill]] }
  0x3f   : > { %s3466_s4 = scalar_lea.hbm %s4838_s2, 16 }
  0x40   : > { %p3467_p1 = scmp.ne.s32.totalorder %s4838_s2, %s3466_s4  ;;  %p3473_p9 = scmp.lt.u32.totalorder %s3466_s4, %s4838_s2 }
  0x42   : > { %p3469_p3 = pnand %p3467_p1, %p3440_p2 }
  0x44   : > { %p3470_p7 = pneg %p3469_p3 }
  0x46   : > { %p3475_p11 = pnand %p3473_p9, %p3470_p7 }
  0x48   : > { %3478 = shalt.err (!%p3475_p11)
}
  0x49   : > { %s3479_s5 = scalar_lea.vmem %s3775_s8, 16  ;;  %s3486_s26 = scalar_lea.vmem %s3775_s8, 32 }
  0x4a   : > { %p3480_p0 = scmp.ne.s32.totalorder %s3775_s8, %s3479_s5  ;;  %p3487_p6 = scmp.lt.s32.totalorder %s3775_s8, %s3775_s8 }
  0x4b   : > { %p3488_p8 = scmp.lt.s32.totalorder %s3486_s26, %s3479_s5 }
  0x4c   : > { %p3482_p4 = pnand %p3480_p0, %p3440_p2 }
  0x4d   : > { %p3489_p10 = por %p3488_p8, %p3487_p6 }
  0x4e   : > { %p3483_p5 = pneg %p3482_p4 }
  0x50   : > { %p3490_p12 = pnand %p3489_p10, %p3483_p5 }
  0x52   : > { %3493 = shalt.err (!%p3490_p12)
}
  0x53   : > { %3233 = dma.hbm_to_vmem [thread:$0]  (!%p3771_p13), %s4838_s2, 16, %s3775_s8, [#allocation6]  }
  0x54   : > { %s29_s11 = sadd.s32 1, %s3642_s20  ;;  %s32_s15 = sadd.s32 1, %s3646_s21 }
  0x55   : > { %p30_p2 = scmp.ge.s32.totalorder %s29_s11, 2  ;;  %s39_s6 = sadd.s32 1, %s3630_s17 }
  0x56   : > { %p46_p1 = scmp.ne.s32.totalorder %s3630_s17, %s3626_s16  ;;  %p47_p3 = scmp.eq.s32.totalorder %s3650_s22, 0 }
  0x57   : > { %s4864_s11 = smov (%p30_p2, %s29_s11), 0  ;;  %s4866_s15 = smov (!%p30_p2, %s32_s15), %s3646_s21 }
  0x58   : > { %4839 = sst [smem:[#allocation15_spill]] %s4864_s11  ;;  %p3837_p7 = por %p47_p3, %p46_p1 }
  0x59   : > { %s105_s24 = ssub.s32 %s3642_s20, %s4864_s11  ;;  %p34_p13 = scmp.ge.s32.totalorder %s4866_s15, 2 }
  0x5a   : > { %p3244_p9 = scmp.lt.s32.totalorder %s3650_s22, 4  ;;  %s170_s8 = sand.u32 1, %s3630_s17  }
  0x5b   : > { %s3211_s4 = smul.u32 2752, %s3646_s21  ;;  %s4868_s15 = smov (%p34_p13, %s4866_s15), 0 }
  0x5c   : > { %s3210_s7 = smul.u32 172, %s170_s8  ;;  %s36_s5 = ssub.s32 %s3646_s21, %s4868_s15 }
  0x5d   : > { %s3853_s29 = scalar_lea.hbm %s4811_s0, %s3211_s4  ;;  %p37_p11 = scmp.eq.s32.totalorder %s36_s5, 0 }
  0x5e   : > { %s106_s9 = sor.u32 %s105_s24, %s36_s5  ;;  %s4841_s1 = sadd.s32 1, %s3618_s14 }
  0x5f   : > { %p107_p0 = scmp.eq.s32.totalorder %s106_s9, 0  ;;  %s174_s11 = scalar_lea.vmem [#allocation2], %s3210_s7 }
  0x60   : > { %s3856_s10 = scalar_select %p37_p11, %s3630_s17, %s39_s6  }
  0x61   : > { %s3861_s2 = scalar_select %p107_p0, %s3618_s14, %s4841_s1  }
  0x62   : > { %s181_s20 = sshll.u32 %s174_s11, 4  ;;  %p3867_p4 = pnand %p3244_p9, %p3837_p7  ;;  %s3871_s20 = int_to_ptr.vmem [resolvable:$true] %s181_s20 }
  0x63   : > { %s3873_s24 = scalar_lea.sflag [#allocation3], %s170_s8  ;;  %s3494_s9 = scalar_lea.hbm %s3853_s29, 2752 }
  0x64   : > { %p3495_p5 = scmp.ne.s32.totalorder %s3853_s29, %s3494_s9  ;;  %p3496_p6 = pneg %p3867_p4 }
  0x65   : > { %s3499_s6 = scalar_lea.hbm %s4811_s0, 5504  ;;  %p3500_p12 = scmp.lt.u32.totalorder %s3853_s29, %s4811_s0 }
  0x66   : > { %p3497_p8 = pnand %p3496_p6, %p3495_p5  ;;  %p3501_p2 = scmp.lt.u32.totalorder %s3499_s6, %s3494_s9 }
  0x67   : > { %p3503_p3 = scmp.lt.u32.totalorder %s3494_s9, %s3853_s29 }
  0x68   : > { %p3498_p10 = pneg %p3497_p8  ;;  %p3502_p1 = por %p3501_p2, %p3500_p12 }
  0x6a   : > { %p3504_p7 = por %p3503_p3, %p3502_p1 }
  0x6c   : > { %p3505_p13 = pnand %p3504_p7, %p3498_p10 }
  0x6e   : > { %3508 = shalt.err (!%p3505_p13)
}
  0x6f   : > { %s3509_s8 = scalar_lea.vmem %s3871_s20, 2752  ;;  %s3656_s7 = smov [#allocation2]  }
  0x70   : > { %p3510_p9 = scmp.ne.s32.totalorder %s3871_s20, %s3509_s8  ;;  %s3514_s5 = sshll.u32 %s3656_s7, 4  ;;  %s3515_s5 = int_to_ptr.vmem [resolvable:$false] %s3514_s5 }
  0x71   : > { %s3516_s12 = scalar_lea.vmem %s3515_s5, 5504  ;;  %p3517_p5 = scmp.lt.s32.totalorder %s3871_s20, %s3515_s5 }
  0x72   : > { %p3512_p11 = pnand %p3510_p9, %p3496_p6  ;;  %p3518_p8 = scmp.lt.s32.totalorder %s3516_s12, %s3509_s8 }
  0x74   : > { %p3513_p0 = pneg %p3512_p11  ;;  %p3519_p12 = por %p3518_p8, %p3517_p5 }
  0x76   : > { %p3520_p2 = pnand %p3519_p12, %p3513_p0 }
  0x78   : > { %3523 = shalt.err (!%p3520_p2)
}
  0x79   : > { %s4843_s9 = smov 4   ;;  %s4844_s1 = smov 64  }
  0x7a   : > { %3237 = dma.hbm_to_vmem [thread:$0]  (!%p3867_p4), %s3853_s29, 2752, %s3871_s20, %s3873_s24, %s4844_s1, %s4844_s1, %s4843_s9  }
  0x7b   : > { %p4845_p6 = scmp.ne.s32.totalorder %s4835_s30, 0 }
  0x7c   : > { %s195_s11 = sand.u32 (!%p4845_p6), 1, %s3626_s16   ;;  %p4846_p10 = scmp.ne.s32.totalorder (!%p4845_p6), %s4831_s27, 0 }
  0x7d   : > { %193 = sbr.rel (%p4845_p6) target bundleno = 727 (0x2d7), region = 32  ;;  %s196_s23 = scalar_lea.sflag (!%p4845_p6), [#allocation3], %s195_s11 }
  0x7e   : > { %s3212_s6 = smul.u32 (!%p4845_p6), 172, %s195_s11 }
  0x80   : > { %s199_s4 = scalar_lea.vmem (!%p4845_p6), [#allocation2], %s3212_s6 }
  0x84   : > { %3597 = dma.done.wait (%p4846_p10), %s196_s23, 2752  }
  0x85   : > { %3599 = vsyncadd (%p4846_p10), %s196_s23, 4294964544  ;;  %p4847_p1 = scmp.ne.s32.totalorder %s4830_s25, 0 }
  0x87   : > { %3601 = dma.done.wait (%p4847_p1), [#allocation6], 9232  }
  0x88   : > { %3603 = vsyncadd (%p4847_p1), [#allocation6], 4294958064  ;;  %v3657_v0 = vmov 0.0   ;;  %vm3658_vm0 = vmmov 0   ;;  %s232_s20 = smul.u32 144, %s3634_s18  ;;  %v3344_v1 = vld [vmem:[#allocation5 + $0x40] sm:$0xff]  }
  0x89   : > { %3194 = vmatprep.subr.bf16.mxu1 %v3657_v0  ;;  %2726 = vmatprep.subr.bf16.mxu0 %v3657_v0  ;;  %v3345_v2 = vld [vmem:[#allocation5 + $0x48] sm:$0xff]   ;;  %v3346_v3 = vld [vmem:[#allocation5 + $0x50] sm:$0xff]   ;;  %v3347_v4 = vld [vmem:[#allocation5 + $0x58] sm:$0xff]   ;;  %vm341_vm1 = vsmask.f32 7424  ;;  %vm759_vm2 = vcmask 1046528  }
  0x8a   : > { %2758 = vmatprep.mubr.msk.bf16.mxu1 %vm3658_vm0, %v3657_v0  ;;  %2742 = vmatprep.mubr.msk.bf16.mxu0 %vm3658_vm0, %v3657_v0  ;;  %s233_s27 = sshra.s32 %s232_s20, 3  ;;  %v3348_v5 = vld [vmem:[#allocation5 + $0x60] sm:$0xff]   ;;  %v3349_v10 = vld [vmem:[#allocation5 + $0x68] sm:$0xff]   ;;  %v3350_v17 = vld [vmem:[#allocation5 + $0x70] sm:$0xff]   ;;  %vm1176_vm3 = vsmask.f32 6400 }
  0x8b   : > { %3202 = vmatpush3.bf16.msra.mxu1 %v3344_v1  ;;  %2727 = vmatpush3.bf16.msra.mxu0 %v3344_v1  ;;  %s2482_s25 = sshll.u32 %s233_s27, 2  ;;  %v3351_v23 = vld [vmem:[#allocation5 + $0x78] sm:$0xff]   ;;  %v3354_v31 = vld [vmem:[#allocation5] sm:$0xff]   ;;  %v3355_v40 = vld [vmem:[#allocation5 + $0x8] sm:$0xff]   ;;  %vm1423_vm4 = vcmask 1045504   ;;  %vm2087_vm5 = vcmask 1044480  }
  0x8c   : > { %3195 = vmatprep.subr.bf16.mxu1 %v3657_v0  ;;  %2728 = vmatprep.subr.bf16.mxu0 %v3657_v0  ;;  %s3926_s30 = scalar_lea.vmem %s199_s4, %s2482_s25 [#allocation2]  ;;  %v3359_v37 = vld [vmem:[#allocation5 + $0x80] sm:$0xff]   ;;  %v3361_v45 = vld [vmem:[#allocation5 + $0x88] sm:$0xff]   ;;  %v3360_v46 = vld [vmem:[#allocation5 + $0x10] sm:$0xff]   ;;  %vm1840_vm6 = vsmask.f32 5376  ;;  %s227_s29 = sand.u32 1, %s3614_s13  }
  0x8d   : > { %v3931_v6 = vld [vmem:[%s3926_s30 + $0x20] sm:$0xff]   ;;  %v3937_v8 = vld [vmem:[%s3926_s30 + $0x8] sm:$0xff]   ;;  %v3968_v25 = vld [vmem:[%s3926_s30 + $0x30] sm:$0xff]   ;;  %s3213_s26 = smul.u32 144, %s227_s29  ;;  %s4750_s11 = scalar_lea.sflag [#allocation4], %s227_s29 }
  0x8e   : > { %v3934_v7 = vld [vmem:[%s3926_s30] sm:$0xff]   ;;  %v3942_v9 = vld [vmem:[%s3926_s30 + $0x28] sm:$0xff]   ;;  %v3945_v11 = vshll.u32 %v3931_v6, 16  ;;  %v350_v13 = vshll.u32 %v3937_v8, 16  ;;  %v354_v16 = vshrl.u32 %v3937_v8, 16  ;;  %v3958_v18 = vshrl.u32 %v3931_v6, 16 }
  0x8f   : > { %3203 = vmatpush3.bf16.msra.mxu1 %v3345_v2  ;;  %2729 = vmatpush3.bf16.msra.mxu0 %v3345_v2  ;;  %v345_v12 = vshll.u32 %v3934_v7, 16  ;;  %v3952_v14 = vshll.u32 %v3942_v9, 16  ;;  %v343_v20 = vshrl.u32 %v3934_v7, 16  ;;  %v3976_v30 = vld [vmem:[%s3926_s30 + $0x10] sm:$0xff]   ;;  %v3981_v32 = vshrl.u32 %v3942_v9, 16  ;;  %v3994_v38 = vld [vmem:[%s3926_s30 + $0x38] sm:$0xff]  }
  0x90   : > { %3196 = vmatprep.subr.bf16.mxu1 %v3657_v0  ;;  %2730 = vmatprep.subr.bf16.mxu0 %v3657_v0  ;;  %v3954_v15 = vrot.slane %v350_v13, 2  ;;  %v376_v19 = vrot.slane %v3945_v11, 1  ;;  %v3962_v22 = vrot.slane %v354_v16, 1  ;;  %v352_v29 = vrot.slane %v350_v13, 1  ;;  %v3997_v39 = vld [vmem:[%s3926_s30 + $0x18] sm:$0xff]   ;;  %v3365_v54 = vld [vmem:[#allocation5 + $0x90] sm:$0xff]  }
  0x91   : > { %v347_v21 = vrot.slane %v345_v12, 1  ;;  %v384_v24 = vrot.slane %v3952_v14, 1  ;;  %v3986_v35 = vshll.u32 %v3968_v25, 16  ;;  %v3989_v36 = vshll.u32 %v3976_v30, 16  ;;  %v4015_v49 = vld [vmem:[%s3926_s30 + $0x48] sm:$0xf] }
  0x92   : > { %v1179_v26 = vor.u32 %v3954_v15, %v3962_v22  ;;  %v380_v27 = vor.u32 %v3958_v18, %v376_v19  ;;  %v356_v43 = vor.u32 %v354_v16, %v352_v29  ;;  %v4009_v47 = vshll.u32 %v3994_v38, 16  ;;  %v3364_v55 = vld [vmem:[#allocation5 + $0x18] sm:$0xff]   ;;  %v4028_v56 = vld [vmem:[%s3926_s30 + $0x40] sm:$0xff]   ;;  %v3370_v16 = vld [vmem:[#allocation5 + $0xa0] sm:$0xff]   ;;  %s4686_s24 = scalar_lea.vmem [#allocation8], %s3213_s26  ;;  %s2356_s8 = smul.u32 18, %s3634_s18 }
  0x93   : > { %3204 = vmatpush3.bf16.msra.mxu1 %v3346_v3  ;;  %2731 = vmatpush3.bf16.msra.mxu0 %v3346_v3  ;;  %v348_v28 = vor.u32 %v347_v21, %v343_v20  ;;  %v388_v41 = vor.u32 %v3981_v32, %v384_v24  ;;  %v392_v42 = vrot.slane %v3986_v35, 1  ;;  %v360_v44 = vrot.slane %v3989_v36, 1  ;;  %v3367_v1 = vld [vmem:[#allocation5 + $0x98] sm:$0xff]   ;;  %v3366_v3 = vld [vmem:[#allocation5 + $0x20] sm:$0xff]   ;;  %v3371_v21 = vld [vmem:[#allocation5 + $0x28] sm:$0xff]   ;;  %s3214_s7 = smul.u32 36, %s3638_s19 }
  0x94   : > { %3197 = vmatprep.subr.bf16.mxu1 %v3657_v0  ;;  %2732 = vmatprep.subr.bf16.mxu0 %v3657_v0  ;;  %v385_v33 = vsel %vm341_vm1, %v380_v27, %v384_v24  ;;  %v4012_v48 = vshll.u32 %v3997_v39, 16  ;;  %v4020_v52 = vshrl.u32 %v3968_v25, 16  ;;  %v4023_v53 = vshrl.u32 %v3976_v30, 16  ;;  %v3372_v24 = vld [vmem:[#allocation5 + $0xa8] sm:$0xff]   ;;  %v3373_v27 = vld [vmem:[#allocation5 + $0x30] sm:$0xff]   ;;  %v3395_v15 = vld [vmem:[#allocation5 + $0x140] sm:$0xff]  }
  0x95   : > { %v353_v34 = vsel %vm341_vm1, %v348_v28, %v352_v29  ;;  %v393_v50 = vsel %vm341_vm1, %v388_v41, %v392_v42  ;;  %v361_v51 = vsel %vm341_vm1, %v356_v43, %v360_v44  ;;  %v2492_v57 = vcombine.low %v4015_v49, %v4015_v49  ;;  %v3377_v41 = vld [vmem:[#allocation5 + $0x38] sm:$0xff]   ;;  %s2361_s5 = sadd.s32 %s3214_s7, %s2356_s8  ;;  %s2364_s19 = sshll.u32 %s4686_s24, 4  ;;  %s4744_s19 = int_to_ptr.vmem [resolvable:$true] %s2364_s19 }
  0x96   : > { %v400_v58 = vrot.slane %v4009_v47, 1  ;;  %v368_v59 = vrot.slane %v4012_v48, 1  ;;  %v396_v60 = vor.u32 %v4020_v52, %v392_v42  ;;  %v364_v61 = vor.u32 %v4023_v53, %v360_v44  ;;  %v3378_v42 = vld [vmem:[#allocation5 + $0xb8] sm:$0xff]   ;;  %v256_v44 = vld [vmem:[%s3926_s30 + $0x4c] sm:$0xf]  ;;  %s2570_s18 = sshll.u32 %s2361_s5, 7 }
  0x97   : > { %3205 = vmatpush3.bf16.msra.mxu1 %v3347_v4  ;;  %2733 = vmatpush3.bf16.msra.mxu0 %v3347_v4  ;;  %v4039_v62 = vrot.slane %v4028_v56, 1  ;;  %v777_v63 = vrot.slane %v2492_v57, 1  ;;  %v4050_v4 = vshrl.u32 %v3994_v38, 16  ;;  %v4055_v12 = vshll.u32 %v4028_v56, 16  ;;  %s4742_s1 = scalar_lea.hbm %s4814_s3, %s2570_s18  ;;  %s3524_s6 = scalar_lea.vmem %s4744_s19, 2304 }
  0x98   : > { %3198 = vmatprep.subr.bf16.mxu1 %v3657_v0  ;;  %2734 = vmatprep.subr.bf16.mxu0 %v3657_v0  ;;  %v4058_v13 = vshrl.u32 %v3997_v39, 16  ;;  %v761_v43 = vrot.slane %v3937_v8, 1  ;;  %p3525_p4 = scmp.ne.s32.totalorder %s4744_s19, %s3524_s6  ;;  %p4848_p3 = scmp.ne.s32.totalorder %s4832_s28, 0 }
  0x99   : > { %v4047_v2 = vsel %vm759_vm2, %v4039_v62, %v777_v63  ;;  %v408_v20 = vrot.slane %v4055_v12, 1  ;;  %v765_v63 = vrot.slane %v3997_v39, 1  ;;  %s3659_s23 = smov [#allocation8]  }
  0x9a   : > { %p3526_p7 = pnand %p3525_p4, %p4848_p3  ;;  %s3528_s4 = sshll.u32 %s3659_s23, 4  ;;  %s3529_s4 = int_to_ptr.vmem [resolvable:$false] %s3528_s4 }
  0x9b   : > { %3206 = vmatpush3.bf16.msra.mxu1 %v3348_v5  ;;  %2735 = vmatpush3.bf16.msra.mxu0 %v3348_v5  ;;  %v401_v5 = vsel %vm341_vm1, %v396_v60, %v400_v58  ;;  %s3530_s20 = scalar_lea.vmem %s3529_s4, 4608  ;;  %p3531_p9 = scmp.lt.s32.totalorder %s4744_s19, %s3529_s4 }
  0x9c   : > { %3199 = vmatprep.subr.bf16.mxu1 %v3657_v0  ;;  %2736 = vmatprep.subr.bf16.mxu0 %v3657_v0  ;;  %p3527_p13 = pneg %p3526_p7  ;;  %p3532_p11 = scmp.lt.s32.totalorder %s3530_s20, %s3524_s6 }
  0x9e   : > { %p3533_p0 = por %p3532_p11, %p3531_p9 }
  0x9f   : > { %3207 = vmatpush3.bf16.msra.mxu1 %v3349_v10  ;;  %2737 = vmatpush3.bf16.msra.mxu0 %v3349_v10  ;;  %v369_v10 = vsel %vm341_vm1, %v364_v61, %v368_v59  ;;  %v3381_v61 = vld [vmem:[#allocation5 + $0xc8] sm:$0xff]  }
  0xa0   : > { %3200 = vmatprep.subr.bf16.mxu1 %v3657_v0  ;;  %2738 = vmatprep.subr.bf16.mxu0 %v3657_v0  ;;  %p3534_p5 = pnand %p3533_p0, %p3527_p13 }
  0xa3   : > { %3208 = vmatpush3.bf16.msra.mxu1 %v3350_v17  ;;  %2739 = vmatpush3.bf16.msra.mxu0 %v3350_v17  ;;  %v404_v17 = vor.u32 %v4050_v4, %v400_v58  ;;  %v3379_v58 = vld [vmem:[#allocation5 + $0xc0] sm:$0xff]  }
  0xa4   : > { %3201 = vmatprep.subr.bf16.mxu1 %v3657_v0  ;;  %2740 = vmatprep.subr.bf16.mxu0 %v3657_v0 }
  0xa5   : > { %v409_v28 = vsel %vm341_vm1, %v404_v17, %v408_v20  ;;  %v3390_v17 = vld [vmem:[#allocation5 + $0x128] sm:$0xff]  }
  0xa7   : > { %3209 = vmatpush3.bf16.msra.mxu1 %v3351_v23  ;;  %2741 = vmatpush3.bf16.msra.mxu0 %v3351_v23  ;;  %v372_v23 = vor.u32 %v4058_v13, %v368_v59  ;;  %v3384_v59 = vld [vmem:[#allocation5 + $0x110] sm:$0xff]  }
  0xa8   : > { %2778 = vmatprep.subr.bf16.mxu1 %v3657_v0  ;;  %2830 = vmatprep.subr.bf16.mxu0 %v3657_v0 }
  0xa9   : > { %v377_v29 = vsel %vm341_vm1, %v372_v23, %v376_v19  ;;  %v3389_v23 = vld [vmem:[#allocation5 + $0xe8] sm:$0xff]  }
  0xaa   : > { %2759 = vmatmul.mubr.bf16.vlgmr.msra.gmra.mrb[0].mxu1 %v385_v33  ;;  %2743 = vmatmul.mubr.bf16.vlgmr.msra.gmra.mrb[0].mxu0 %v353_v34  ;;  %v414_v33 = vshll.u32 %v2492_v57, 16  ;;  %v3376_v34 = vld [vmem:[#allocation5 + $0xb0] sm:$0xff]   ;;  %v3382_v57 = vld [vmem:[#allocation5 + $0x108] sm:$0xff]  }
  0xab   : > { %2779 = vmatpush3.bf16.msra.mxu1 %v3354_v31  ;;  %2762 = vmatprep.mubr.msk.bf16.mxu1 %vm3658_vm0, %v3657_v0  ;;  %v4076_v31 = vshrl.u32 %v4028_v56, 16 }
  0xac   : > { %2780 = vmatprep.subr.bf16.mxu1 %v3657_v0  ;;  %2831 = vmatpush3.bf16.msra.mxu0 %v3359_v37  ;;  %v760_v37 = vrot.slane %v3934_v7, 1 }
  0xad   : > { %2832 = vmatprep.subr.bf16.mxu0 %v3657_v0  ;;  %2746 = vmatprep.mubr.msk.bf16.mxu0 %vm3658_vm0, %v3657_v0  ;;  %v412_v19 = vor.u32 %v4076_v31, %v408_v20 }
  0xaf   : > { %2781 = vmatpush3.bf16.msra.mxu1 %v3355_v40  ;;  %v416_v40 = vrot.slane %v414_v33, 1  ;;  %v3393_v33 = vld [vmem:[#allocation5 + $0xf8] sm:$0xff]  }
  0xb0   : > { %2782 = vmatprep.subr.bf16.mxu1 %v3657_v0  ;;  %2833 = vmatpush3.bf16.msra.mxu0 %v3361_v45 }
  0xb1   : > { %2834 = vmatprep.subr.bf16.mxu0 %v3657_v0  ;;  %v417_v45 = vsel %vm341_vm1, %v412_v19, %v416_v40  ;;  %v773_v19 = vrot.slane %v3994_v38, 1 }
  0xb2   : > { %2763 = vmatmul.mubr.bf16.gmra.mrb[4].mxu1 %v393_v50  ;;  %2747 = vmatmul.mubr.bf16.gmra.mrb[4].mxu0 %v361_v51  ;;  %v762_v50 = vsel %vm759_vm2, %v760_v37, %v761_v43  ;;  %v4094_v51 = vcombine.low %v4015_v49, %v256_v44  ;;  %v1185_v44 = vrot.slane %v4012_v48, 2 }
  0xb3   : > { %2783 = vmatpush3.bf16.msra.mxu1 %v3360_v46  ;;  %2766 = vmatprep.mubr.msk.bf16.mxu1 %vm3658_vm0, %v3657_v0  ;;  %v3380_v46 = vld [vmem:[#allocation5 + $0x100] sm:$0xff]  }
  0xb4   : > { %2784 = vmatprep.subr.bf16.mxu1 %v3657_v0  ;;  %2835 = vmatpush3.bf16.msra.mxu0 %v3365_v54  ;;  %v982_v54 = vrot.slane %v4094_v51, 1 }
  0xb5   : > { %2836 = vmatprep.subr.bf16.mxu0 %v3657_v0  ;;  %2750 = vmatprep.mubr.msk.bf16.mxu0 %vm3658_vm0, %v3657_v0 }
  0xb6   : > { %v4108_v49 = vsel %vm759_vm2, %v4039_v62, %v982_v54 }
  0xb7   : > { %2785 = vmatpush3.bf16.msra.mxu1 %v3364_v55  ;;  %v763_v55 = vrot.slane %v3976_v30, 1 }
  0xb8   : > { %2786 = vmatprep.subr.bf16.mxu1 %v3657_v0  ;;  %2837 = vmatpush3.bf16.msra.mxu0 %v3367_v1  ;;  %v3386_v1 = vld [vmem:[#allocation5 + $0x118] sm:$0xff]  }
  0xb9   : > { %2838 = vmatprep.subr.bf16.mxu0 %v3657_v0  ;;  %v4111_v60 = vsel %vm759_vm2, %v761_v43, %v763_v55  ;;  %v1184_v43 = vrot.slane %v4058_v13, 1 }
  0xba   : > { %2767 = vmatmul.mubr.bf16.gmra.mrb[8].mxu1 %v401_v5  ;;  %2751 = vmatmul.mubr.bf16.gmra.mrb[8].mxu0 %v369_v10  ;;  %v3388_v5 = vld [vmem:[#allocation5 + $0x120] sm:$0xff]   ;;  %v3385_v10 = vld [vmem:[#allocation5 + $0xd8] sm:$0xff]  }
  0xbb   : > { %2787 = vmatpush3.bf16.msra.mxu1 %v3366_v3  ;;  %2770 = vmatprep.mubr.msk.bf16.mxu1 %vm3658_vm0, %v3657_v0  ;;  %v3383_v3 = vld [vmem:[#allocation5 + $0xd0] sm:$0xff]  }
  0xbc   : > { %2788 = vmatprep.subr.bf16.mxu1 %v3657_v0  ;;  %2839 = vmatpush3.bf16.msra.mxu0 %v3370_v16  ;;  %v767_v16 = vrot.slane %v3931_v6, 1 }
  0xbd   : > { %2840 = vmatprep.subr.bf16.mxu0 %v3657_v0  ;;  %2754 = vmatprep.mubr.msk.bf16.mxu0 %vm3658_vm0, %v3657_v0 }
  0xbe   : > { %v4139_v20 = vsel %vm759_vm2, %v765_v63, %v767_v16 }
  0xbf   : > { %2789 = vmatpush3.bf16.msra.mxu1 %v3371_v21  ;;  %v3392_v21 = vld [vmem:[#allocation5 + $0x130] sm:$0xff]  }
  0xc0   : > { %2841 = vmatpush3.bf16.msra.mxu0 %v3372_v24  ;;  %2790 = vmatprep.subr.bf16.mxu1 %v3657_v0  ;;  %v769_v24 = vrot.slane %v3942_v9, 1 }
  0xc1   : > { %2842 = vmatprep.subr.bf16.mxu0 %v3657_v0 }
  0xc2   : > { %2771 = vmatmul.mubr.bf16.gmra.mrb[12].mxu1 %v409_v28  ;;  %2755 = vmatmul.mubr.bf16.gmra.mrb[12].mxu0 %v377_v29  ;;  %v3391_v28 = vld [vmem:[#allocation5 + $0xf0] sm:$0xff]   ;;  %v4153_v29 = vsel %vm759_vm2, %v767_v16, %v769_v24 }
  0xc3   : > { %2774 = vmatprep.mubr.msk.bf16.mxu1 %vm3658_vm0, %v3657_v0  ;;  %2791 = vmatpush3.bf16.msra.mxu1 %v3373_v27  ;;  %v3394_v27 = vld [vmem:[#allocation5 + $0x138] sm:$0xff]  }
  0xc4   : > { %2843 = vmatpush3.bf16.msra.mxu0 %v3376_v34  ;;  %2792 = vmatprep.subr.bf16.mxu1 %v3657_v0  ;;  %v771_v34 = vrot.slane %v3968_v25, 1 }
  0xc5   : > { %2844 = vmatprep.subr.bf16.mxu0 %v3657_v0  ;;  %2846 = vmatprep.mubr.msk.bf16.mxu0 %vm3658_vm0, %v3657_v0 }
  0xc6   : > { %v4166_v37 = vsel %vm759_vm2, %v769_v24, %v771_v34  ;;  %v4176_v40 = vsel %vm759_vm2, %v771_v34, %v773_v19  ;;  %v1201_v34 = vrot.slane %v4009_v47, 2 }
  0xc7   : > { %2793 = vmatpush3.bf16.msra.mxu1 %v3377_v41  ;;  %v1181_v41 = vrot.slane %v3989_v36, 2 }
  0xc8   : > { %2845 = vmatpush3.bf16.msra.mxu0 %v3378_v42  ;;  %2882 = vmatprep.subr.bf16.mxu1 %v3657_v0  ;;  %v3396_v42 = vld [vmem:[#allocation5 + $0x180] sm:$0xff]  }
  0xc9   : > { %2934 = vmatprep.subr.bf16.mxu0 %v3657_v0 }
  0xca   : > { %2775 = vmatmul.mubr.bf16.gmra.mrb[16].mxu1 %v417_v45  ;;  %v3398_v45 = vld [vmem:[#allocation5 + $0x188] sm:$0xff]  }
  0xcb   : > { %2794 = vmatprep.mubr.msk.bf16.mxu1 %vm3658_vm0, %v3657_v0  ;;  %2847 = vmatmul.mubr.bf16.vlgmr.msra.gmra.mrb[16].mxu0 %v762_v50  ;;  %v3400_v50 = vld [vmem:[#allocation5 + $0x190] sm:$0xff]  }
  0xcc   : > { %2935 = vmatpush3.bf16.msra.mxu0 %v3380_v46  ;;  %2850 = vmatprep.mubr.msk.bf16.mxu0 %vm3658_vm0, %v3657_v0  ;;  %v1189_v46 = vrot.slane %v3945_v11, 2 }
  0xcd   : > { %2936 = vmatprep.subr.bf16.mxu0 %v3657_v0 }
  0xd0   : > { %2937 = vmatpush3.bf16.msra.mxu0 %v3382_v57 }
  0xd1   : > { %2938 = vmatprep.subr.bf16.mxu0 %v3657_v0 }
  0xd2   : > { %2795 = vmatmul.mubr.bf16.vlgmr.msra.gmra.mrb[20].mxu1 %v3934_v7  ;;  %v4125_v7 = vsel %vm759_vm2, %v763_v55, %v765_v63  ;;  %v3397_v55 = vld [vmem:[#allocation5 + $0x148] sm:$0xff]   ;;  %v1193_v63 = vrot.slane %v3952_v14, 2 }
  0xd3   : > { %2883 = vmatpush3.bf16.msra.mxu1 %v3379_v58  ;;  %2798 = vmatprep.mubr.msk.bf16.mxu1 %vm3658_vm0, %v3657_v0  ;;  %v3402_v58 = vld [vmem:[#allocation5 + $0x198] sm:$0xff]  }
  0xd4   : > { %2851 = vmatmul.mubr.bf16.gmra.mrb[20].mxu0 %v4111_v60  ;;  %2884 = vmatprep.subr.bf16.mxu1 %v3657_v0 }
  0xd5   : > { %2854 = vmatprep.mubr.msk.bf16.mxu0 %vm3658_vm0, %v3657_v0  ;;  %2939 = vmatpush3.bf16.msra.mxu0 %v3384_v59  ;;  %v3399_v59 = vld [vmem:[#allocation5 + $0x150] sm:$0xff]  }
  0xd6   : > { %2940 = vmatprep.subr.bf16.mxu0 %v3657_v0 }
  0xd7   : > { %2885 = vmatpush3.bf16.msra.mxu1 %v3381_v61  ;;  %v1192_v61 = vrot.slane %v3981_v32, 1 }
  0xd8   : > { %2886 = vmatprep.subr.bf16.mxu1 %v3657_v0 }
  0xd9   : > { %2941 = vmatpush3.bf16.msra.mxu0 %v3386_v1  ;;  %v3404_v1 = vld [vmem:[#allocation5 + $0x1a0] sm:$0xff]  }
  0xda   : > { %2799 = vmatmul.mubr.bf16.gmra.mrb[24].mxu1 %v3937_v8  ;;  %2942 = vmatprep.subr.bf16.mxu0 %v3657_v0  ;;  %v3387_v8 = vld [vmem:[#allocation5 + $0xe0] sm:$0xff]  }
  0xdb   : > { %2802 = vmatprep.mubr.msk.bf16.mxu1 %vm3658_vm0, %v3657_v0  ;;  %2887 = vmatpush3.bf16.msra.mxu1 %v3383_v3  ;;  %v3401_v3 = vld [vmem:[#allocation5 + $0x158] sm:$0xff]  }
  0xdc   : > { %2855 = vmatmul.mubr.bf16.gmra.mrb[24].mxu0 %v4125_v7  ;;  %2888 = vmatprep.subr.bf16.mxu1 %v3657_v0 }
  0xdd   : > { %2858 = vmatprep.mubr.msk.bf16.mxu0 %vm3658_vm0, %v3657_v0  ;;  %2943 = vmatpush3.bf16.msra.mxu0 %v3388_v5  ;;  %v1194_v5 = vor.u32 %v1193_v63, %v1192_v61  ;;  %v3413_v63 = vld [vmem:[#allocation5 + $0x200] sm:$0xff]  }
  0xde   : > { %2944 = vmatprep.subr.bf16.mxu0 %v3657_v0 }
  0xdf   : > { %2889 = vmatpush3.bf16.msra.mxu1 %v3385_v10  ;;  %v3406_v10 = vld [vmem:[#allocation5 + $0x1a8] sm:$0xff]  }
  0xe0   : > { %2890 = vmatprep.subr.bf16.mxu1 %v3657_v0 }
  0xe1   : > { %2945 = vmatpush3.bf16.msra.mxu0 %v3390_v17  ;;  %v1196_v17 = vrot.slane %v4020_v52, 1 }
  0xe2   : > { %2803 = vmatmul.mubr.bf16.gmra.mrb[28].mxu1 %v3976_v30  ;;  %2946 = vmatprep.subr.bf16.mxu0 %v3657_v0 }
  0xe3   : > { %2806 = vmatprep.mubr.msk.bf16.mxu1 %vm3658_vm0, %v3657_v0  ;;  %2891 = vmatpush3.bf16.msra.mxu1 %v3387_v8  ;;  %v1197_v8 = vrot.slane %v3986_v35, 2 }
  0xe4   : > { %2859 = vmatmul.mubr.bf16.gmra.mrb[28].mxu0 %v4139_v20  ;;  %2892 = vmatprep.subr.bf16.mxu1 %v3657_v0 }
  0xe5   : > { %2862 = vmatprep.mubr.msk.bf16.mxu0 %vm3658_vm0, %v3657_v0  ;;  %2947 = vmatpush3.bf16.msra.mxu0 %v3392_v21  ;;  %v3408_v21 = vld [vmem:[#allocation5 + $0x1b0] sm:$0xff]   ;;  %v1198_v24 = vor.u32 %v1197_v8, %v1196_v17  ;;  %v3414_v17 = vld [vmem:[#allocation5 + $0x1c8] sm:$0xff]  }
  0xe6   : > { %2948 = vmatprep.subr.bf16.mxu0 %v3657_v0  ;;  %v4328_v8 = vld [vmem:[%s3926_s30 + $0x28] sm:$0xff]  }
  0xe7   : > { %2893 = vmatpush3.bf16.msra.mxu1 %v3389_v23  ;;  %v3405_v23 = vld [vmem:[#allocation5 + $0x168] sm:$0xff]  }
  0xe8   : > { %2894 = vmatprep.subr.bf16.mxu1 %v3657_v0 }
  0xe9   : > { %2949 = vmatpush3.bf16.msra.mxu0 %v3394_v27  ;;  %v3411_v27 = vld [vmem:[#allocation5 + $0x1b8] sm:$0xff]  }
  0xea   : > { %2807 = vmatmul.mubr.bf16.gmra.mrb[32].mxu1 %v3997_v39  ;;  %3038 = vmatprep.subr.bf16.mxu0 %v3657_v0 }
  0xeb   : > { %2810 = vmatprep.mubr.msk.bf16.mxu1 %vm3658_vm0, %v3657_v0  ;;  %2895 = vmatpush3.bf16.msra.mxu1 %v3391_v28  ;;  %v1199_v28 = vsel %vm1176_vm3, %v1194_v5, %v1198_v24 }
  0xec   : > { %2863 = vmatmul.mubr.bf16.gmra.mrb[32].mxu0 %v4153_v29  ;;  %2896 = vmatprep.subr.bf16.mxu1 %v3657_v0 }
  0xed   : > { %2866 = vmatprep.mubr.msk.bf16.mxu0 %vm3658_vm0, %v3657_v0 }
  0xef   : > { %2897 = vmatpush3.bf16.msra.mxu1 %v3393_v33  ;;  %v1200_v33 = vrot.slane %v4050_v4, 1 }
  0xf0   : > { %2986 = vmatprep.subr.bf16.mxu1 %v3657_v0 }
  0xf2   : > { %2811 = vmatmul.mubr.bf16.gmra.mrb[36].mxu1 %v3931_v6  ;;  %v4186_v6 = vsel %vm759_vm2, %v773_v19, %v4039_v62  ;;  %v3410_v19 = vld [vmem:[#allocation5 + $0x178] sm:$0xff]  }
  0xf3   : > { %2814 = vmatprep.mubr.msk.bf16.mxu1 %vm3658_vm0, %v3657_v0 }
  0xf4   : > { %2867 = vmatmul.mubr.bf16.gmra.mrb[36].mxu0 %v4166_v37 }
  0xf5   : > { %2870 = vmatprep.mubr.msk.bf16.mxu0 %vm3658_vm0, %v3657_v0 }
  0xfa   : > { %2815 = vmatmul.mubr.bf16.gmra.mrb[40].mxu1 %v3942_v9  ;;  %v1180_v9 = vrot.slane %v4023_v53, 1 }
  0xfb   : > { %2818 = vmatprep.mubr.msk.bf16.mxu1 %vm3658_vm0, %v3657_v0 }
  0xfc   : > { %2871 = vmatmul.mubr.bf16.gmra.mrb[40].mxu0 %v4176_v40 }
  0xfd   : > { %2874 = vmatprep.mubr.msk.bf16.mxu0 %vm3658_vm0, %v3657_v0 }
 0x102   : > { %2819 = vmatmul.mubr.bf16.gmra.mrb[44].mxu1 %v3968_v25  ;;  %v1182_v25 = vor.u32 %v1181_v41, %v1180_v9  ;;  %v1202_v9 = vor.u32 %v1201_v34, %v1200_v33  ;;  %v1204_v41 = vrot.slane %v4076_v31, 1  ;;  %v4341_v33 = vld [vmem:[%s3926_s30 + $0x30] sm:$0xff]  }
 0x103   : > { %2822 = vmatprep.mubr.msk.bf16.mxu1 %vm3658_vm0, %v3657_v0  ;;  %v1433_v34 = vrot.slane %v4341_v33, 2 }
 0x104   : > { %2875 = vmatmul.mubr.bf16.gmra.mrb[44].mxu0 %v4186_v6  ;;  %v1183_v62 = vsel %vm1176_vm3, %v1179_v26, %v1182_v25  ;;  %v1188_v26 = vrot.slane %v3958_v18, 1 }
 0x105   : > { %2878 = vmatprep.mubr.msk.bf16.mxu0 %vm3658_vm0, %v3657_v0 }
 0x106   : > { %v1190_v57 = vor.u32 %v1189_v46, %v1188_v26 }
 0x108   : > { %v1195_v16 = vsel %vm1176_vm3, %v1190_v57, %v1194_v5 }
 0x10a   : > { %2823 = vmatmul.mubr.bf16.gmra.mrb[48].mxu1 %v3994_v38 }
 0x10b   : > { %2826 = vmatprep.mubr.msk.bf16.mxu1 %vm3658_vm0, %v3657_v0 }
 0x10c   : > { %2879 = vmatmul.mubr.bf16.gmra.mrb[48].mxu0 %v4047_v2  ;;  %v1186_v2 = vor.u32 %v1185_v44, %v1184_v43  ;;  %v1212_v43 = vshll.u32 %v4094_v51, 16  ;;  %v4272_v44 = vld [vmem:[%s3926_s30 + $0x50] sm:$0xf] }
 0x10d   : > { %2950 = vmatprep.mubr.msk.bf16.mxu0 %vm3658_vm0, %v3657_v0 }
 0x10e   : > { %v1187_v22 = vsel %vm1176_vm3, %v1182_v25, %v1186_v2  ;;  %v1205_v25 = vrot.slane %v4055_v12, 2 }
 0x112   : > { %2827 = vmatmul.mubr.bf16.gmra.mrb[52].mxu1 %v4028_v56 }
 0x113   : > { %2898 = vmatprep.mubr.msk.bf16.mxu1 %vm3658_vm0, %v3657_v0 }
 0x114   : > { %2951 = vmatmul.mubr.bf16.vlgmr.msra.gmra.mrb[52].mxu0 %v1183_v62  ;;  %v1206_v62 = vor.u32 %v1205_v25, %v1204_v41  ;;  %v3426_v41 = vld [vmem:[#allocation5 + $0x230] sm:$0xff]   ;;  %v3422_v25 = vld [vmem:[#allocation5 + $0x1e8] sm:$0xff]  }
 0x115   : > { %3039 = vmatpush3.bf16.msra.mxu0 %v3396_v42  ;;  %2954 = vmatprep.mubr.msk.bf16.mxu0 %vm3658_vm0, %v3657_v0  ;;  %v1209_v42 = vshrl.u32 %v4094_v51, 16 }
 0x116   : > { %3040 = vmatprep.subr.bf16.mxu0 %v3657_v0 }
 0x119   : > { %3041 = vmatpush3.bf16.msra.mxu0 %v3398_v45  ;;  %v1211_v45 = vrot.slane %v1209_v42, 1 }
 0x11a   : > { %2899 = vmatmul.mubr.bf16.vlgmr.msra.gmra.mrb[56].mxu1 %v4111_v60  ;;  %3042 = vmatprep.subr.bf16.mxu0 %v3657_v0  ;;  %v1191_v60 = vsel %vm1176_vm3, %v1186_v2, %v1190_v57  ;;  %v1207_v2 = vsel %vm1176_vm3, %v1202_v9, %v1206_v62 }
 0x11b   : > { %2987 = vmatpush3.bf16.msra.mxu1 %v3395_v15  ;;  %2902 = vmatprep.mubr.msk.bf16.mxu1 %vm3658_vm0, %v3657_v0  ;;  %v4281_v15 = vcombine.low %v4272_v44, %v4272_v44 }
 0x11c   : > { %2955 = vmatmul.mubr.bf16.gmra.mrb[56].mxu0 %v1187_v22  ;;  %2988 = vmatprep.subr.bf16.mxu1 %v3657_v0 }
 0x11d   : > { %2958 = vmatprep.mubr.msk.bf16.mxu0 %vm3658_vm0, %v3657_v0  ;;  %3043 = vmatpush3.bf16.msra.mxu0 %v3400_v50  ;;  %v1218_v26 = vshrl.u32 %v4281_v15, 16  ;;  %v1221_v46 = vshll.u32 %v4281_v15, 16 }
 0x11e   : > { %3044 = vmatprep.subr.bf16.mxu0 %v3657_v0 }
 0x11f   : > { %2989 = vmatpush3.bf16.msra.mxu1 %v3397_v55  ;;  %v1220_v55 = vrot.slane %v1218_v26, 1  ;;  %v1223_v57 = vrot.slane %v1221_v46, 2  ;;  %v1437_v46 = vrot.slane %v4028_v56, 2 }
 0x120   : > { %2990 = vmatprep.subr.bf16.mxu1 %v3657_v0 }
 0x121   : > { %3045 = vmatpush3.bf16.msra.mxu0 %v3402_v58 }
 0x122   : > { %2903 = vmatmul.mubr.bf16.gmra.mrb[60].mxu1 %v4125_v7  ;;  %3046 = vmatprep.subr.bf16.mxu0 %v3657_v0  ;;  %v3403_v7 = vld [vmem:[#allocation5 + $0x160] sm:$0xff]  }
 0x123   : > { %2906 = vmatprep.mubr.msk.bf16.mxu1 %vm3658_vm0, %v3657_v0  ;;  %2991 = vmatpush3.bf16.msra.mxu1 %v3399_v59  ;;  %v984_v59 = vrot.slane %v4281_v15, 1 }
 0x124   : > { %2959 = vmatmul.mubr.bf16.gmra.mrb[60].mxu0 %v1191_v60  ;;  %2992 = vmatprep.subr.bf16.mxu1 %v3657_v0  ;;  %v1427_v60 = vrot.slane %v3997_v39, 2 }
 0x125   : > { %2962 = vmatprep.mubr.msk.bf16.mxu0 %vm3658_vm0, %v3657_v0  ;;  %3047 = vmatpush3.bf16.msra.mxu0 %v3404_v1  ;;  %v985_v61 = vsel %vm759_vm2, %v982_v54, %v984_v59  ;;  %v3430_v1 = vld [vmem:[%s3926_s30 + $0x8] sm:$0xff]   ;;  %v3415_v54 = vld [vmem:[#allocation5 + $0x208] sm:$0xff]  }
 0x126   : > { %3048 = vmatprep.subr.bf16.mxu0 %v3657_v0 }
 0x127   : > { %2993 = vmatpush3.bf16.msra.mxu1 %v3401_v3  ;;  %v1424_v3 = vrot.slane %v3430_v1, 2  ;;  %v258_v1 = vld [vmem:[%s3926_s30 + $0x54] sm:$0xf] }
 0x128   : > { %2994 = vmatprep.subr.bf16.mxu1 %v3657_v0 }
 0x129   : > { %3049 = vmatpush3.bf16.msra.mxu0 %v3406_v10  ;;  %v3412_v10 = vld [vmem:[#allocation5 + $0x1c0] sm:$0xff]  }
 0x12a   : > { %2907 = vmatmul.mubr.bf16.gmra.mrb[64].mxu1 %v4139_v20  ;;  %3050 = vmatprep.subr.bf16.mxu0 %v3657_v0  ;;  %v3407_v20 = vld [vmem:[#allocation5 + $0x170] sm:$0xff]  }
 0x12b   : > { %2910 = vmatprep.mubr.msk.bf16.mxu1 %vm3658_vm0, %v3657_v0  ;;  %2995 = vmatpush3.bf16.msra.mxu1 %v3403_v7 }
 0x12c   : > { %2963 = vmatmul.mubr.bf16.gmra.mrb[64].mxu0 %v1195_v16  ;;  %2996 = vmatprep.subr.bf16.mxu1 %v3657_v0  ;;  %v3417_v16 = vld [vmem:[#allocation5 + $0x210] sm:$0xff]  }
 0x12d   : > { %2966 = vmatprep.mubr.msk.bf16.mxu0 %vm3658_vm0, %v3657_v0  ;;  %3051 = vmatpush3.bf16.msra.mxu0 %v3408_v21  ;;  %v1431_v21 = vrot.slane %v4328_v8, 2 }
 0x12e   : > { %3052 = vmatprep.subr.bf16.mxu0 %v3657_v0 }
 0x12f   : > { %2997 = vmatpush3.bf16.msra.mxu1 %v3405_v23  ;;  %v3419_v23 = vld [vmem:[#allocation5 + $0x218] sm:$0xff]  }
 0x130   : > { %2998 = vmatprep.subr.bf16.mxu1 %v3657_v0 }
 0x131   : > { %3053 = vmatpush3.bf16.msra.mxu0 %v3411_v27 }
 0x132   : > { %2911 = vmatmul.mubr.bf16.gmra.mrb[68].mxu1 %v4153_v29  ;;  %3142 = vmatprep.subr.bf16.mxu0 %v3657_v0  ;;  %v1203_v29 = vsel %vm1176_vm3, %v1198_v24, %v1202_v9  ;;  %v3416_v24 = vld [vmem:[#allocation5 + $0x1d0] sm:$0xff]   ;;  %v3420_v9 = vld [vmem:[#allocation5 + $0x1e0] sm:$0xff]  }
 0x133   : > { %2914 = vmatprep.mubr.msk.bf16.mxu1 %vm3658_vm0, %v3657_v0  ;;  %2999 = vmatpush3.bf16.msra.mxu1 %v3407_v20  ;;  %v3421_v20 = vld [vmem:[#allocation5 + $0x220] sm:$0xff]  }
 0x134   : > { %2967 = vmatmul.mubr.bf16.gmra.mrb[68].mxu0 %v1199_v28  ;;  %3000 = vmatprep.subr.bf16.mxu1 %v3657_v0  ;;  %v3418_v28 = vld [vmem:[#allocation5 + $0x1d8] sm:$0xff]  }
 0x135   : > { %2970 = vmatprep.mubr.msk.bf16.mxu0 %vm3658_vm0, %v3657_v0 }
 0x137   : > { %3001 = vmatpush3.bf16.msra.mxu1 %v3410_v19  ;;  %v3423_v19 = vld [vmem:[#allocation5 + $0x228] sm:$0xff]  }
 0x138   : > { %3090 = vmatprep.subr.bf16.mxu1 %v3657_v0 }
 0x13a   : > { %2915 = vmatmul.mubr.bf16.gmra.mrb[72].mxu1 %v4166_v37  ;;  %v1214_v37 = vrot.slane %v1212_v43, 2 }
 0x13b   : > { %2918 = vmatprep.mubr.msk.bf16.mxu1 %vm3658_vm0, %v3657_v0 }
 0x13c   : > { %2971 = vmatmul.mubr.bf16.gmra.mrb[72].mxu0 %v1203_v29  ;;  %v1215_v22 = vor.u32 %v1214_v37, %v1211_v45  ;;  %v1434_v29 = vsel %vm1423_vm4, %v1431_v21, %v1433_v34  ;;  %v3424_v45 = vld [vmem:[#allocation5 + $0x1f0] sm:$0xff]  }
 0x13d   : > { %2974 = vmatprep.mubr.msk.bf16.mxu0 %vm3658_vm0, %v3657_v0 }
 0x13e   : > { %v1216_v50 = vsel %vm1176_vm3, %v1206_v62, %v1215_v22  ;;  %v1435_v62 = vrot.slane %v3994_v38, 2 }
 0x140   : > { %v1436_v37 = vsel %vm1423_vm4, %v1433_v34, %v1435_v62 }
 0x142   : > { %2919 = vmatmul.mubr.bf16.gmra.mrb[76].mxu1 %v4176_v40  ;;  %v1224_v40 = vor.u32 %v1223_v57, %v1220_v55 }
 0x143   : > { %2922 = vmatprep.mubr.msk.bf16.mxu1 %vm3658_vm0, %v3657_v0 }
 0x144   : > { %2975 = vmatmul.mubr.bf16.gmra.mrb[76].mxu0 %v1207_v2  ;;  %v1225_v58 = vsel %vm1176_vm3, %v1215_v22, %v1224_v40  ;;  %v3429_v2 = vld [vmem:[#allocation5 + $0x238] sm:$0xff]  }
 0x145   : > { %2978 = vmatprep.mubr.msk.bf16.mxu0 %vm3658_vm0, %v3657_v0  ;;  %v3428_v22 = vld [vmem:[#allocation5 + $0x1f8] sm:$0xff]  }
 0x14a   : > { %2923 = vmatmul.mubr.bf16.gmra.mrb[80].mxu1 %v4186_v6  ;;  %v1425_v6 = vrot.slane %v3976_v30, 2  ;;  %v4315_v30 = vld [vmem:[%s3926_s30 + $0x20] sm:$0xff]  }
 0x14b   : > { %2926 = vmatprep.mubr.msk.bf16.mxu1 %vm3658_vm0, %v3657_v0  ;;  %v1429_v39 = vrot.slane %v4315_v30, 2 }
 0x14c   : > { %2979 = vmatmul.mubr.bf16.gmra.mrb[80].mxu0 %v1216_v50  ;;  %v1426_v5 = vsel %vm1423_vm4, %v1424_v3, %v1425_v6 }
 0x14d   : > { %2982 = vmatprep.mubr.msk.bf16.mxu0 %vm3658_vm0, %v3657_v0  ;;  %v1430_v7 = vsel %vm1423_vm4, %v1427_v60, %v1429_v39  ;;  %v1432_v27 = vsel %vm1423_vm4, %v1429_v39, %v1431_v21 }
 0x152   : > { %2927 = vmatmul.mubr.bf16.gmra.mrb[84].mxu1 %v4108_v49  ;;  %v1428_v49 = vsel %vm1423_vm4, %v1425_v6, %v1427_v60  ;;  %v1438_v6 = vsel %vm1423_vm4, %v1435_v62, %v1437_v46 }
 0x153   : > { %2930 = vmatprep.mubr.msk.bf16.mxu1 %vm3658_vm0, %v3657_v0 }
 0x154   : > { %2983 = vmatmul.mubr.bf16.gmra.mrb[84].mxu0 %v1225_v58 }
 0x155   : > { %3054 = vmatprep.mubr.msk.bf16.mxu0 %vm3658_vm0, %v3657_v0 }
 0x15a   : > { %2931 = vmatmul.mubr.bf16.gmra.mrb[88].mxu1 %v985_v61  ;;  %v1439_v61 = vrot.slane %v4094_v51, 2 }
 0x15b   : > { %3002 = vmatprep.mubr.msk.bf16.mxu1 %vm3658_vm0, %v3657_v0 }
 0x15c   : > { %3055 = vmatmul.mubr.bf16.vlgmr.msra.gmra.mrb[88].mxu0 %v1428_v49 }
 0x15d   : > { %3143 = vmatpush3.bf16.msra.mxu0 %v3413_v63  ;;  %3058 = vmatprep.mubr.msk.bf16.mxu0 %vm3658_vm0, %v3657_v0 }
 0x15e   : > { %3144 = vmatprep.subr.bf16.mxu0 %v3657_v0 }
 0x161   : > { %3145 = vmatpush3.bf16.msra.mxu0 %v3415_v54 }
 0x162   : > { %3003 = vmatmul.mubr.bf16.vlgmr.msra.gmra.mrb[92].mxu1 %v1426_v5  ;;  %3146 = vmatprep.subr.bf16.mxu0 %v3657_v0 }
 0x163   : > { %3091 = vmatpush3.bf16.msra.mxu1 %v3412_v10  ;;  %3006 = vmatprep.mubr.msk.bf16.mxu1 %vm3658_vm0, %v3657_v0  ;;  %v1440_v10 = vsel %vm1423_vm4, %v1437_v46, %v1439_v61 }
 0x164   : > { %3059 = vmatmul.mubr.bf16.gmra.mrb[92].mxu0 %v1430_v7  ;;  %3092 = vmatprep.subr.bf16.mxu1 %v3657_v0 }
 0x165   : > { %3062 = vmatprep.mubr.msk.bf16.mxu0 %vm3658_vm0, %v3657_v0  ;;  %3147 = vmatpush3.bf16.msra.mxu0 %v3417_v16 }
 0x166   : > { %3148 = vmatprep.subr.bf16.mxu0 %v3657_v0 }
 0x167   : > { %3093 = vmatpush3.bf16.msra.mxu1 %v3414_v17 }
 0x168   : > { %3094 = vmatprep.subr.bf16.mxu1 %v3657_v0 }
 0x169   : > { %3149 = vmatpush3.bf16.msra.mxu0 %v3419_v23 }
 0x16a   : > { %3007 = vmatmul.mubr.bf16.gmra.mrb[96].mxu1 %v1428_v49  ;;  %3150 = vmatprep.subr.bf16.mxu0 %v3657_v0 }
 0x16b   : > { %3010 = vmatprep.mubr.msk.bf16.mxu1 %vm3658_vm0, %v3657_v0  ;;  %3095 = vmatpush3.bf16.msra.mxu1 %v3416_v24 }
 0x16c   : > { %3063 = vmatmul.mubr.bf16.gmra.mrb[96].mxu0 %v1432_v27  ;;  %3096 = vmatprep.subr.bf16.mxu1 %v3657_v0 }
 0x16d   : > { %3066 = vmatprep.mubr.msk.bf16.mxu0 %vm3658_vm0, %v3657_v0  ;;  %3151 = vmatpush3.bf16.msra.mxu0 %v3421_v20 }
 0x16e   : > { %3152 = vmatprep.subr.bf16.mxu0 %v3657_v0 }
 0x16f   : > { %3097 = vmatpush3.bf16.msra.mxu1 %v3418_v28 }
 0x170   : > { %3098 = vmatprep.subr.bf16.mxu1 %v3657_v0 }
 0x171   : > { %3153 = vmatpush3.bf16.msra.mxu0 %v3423_v19  ;;  %v4405_v19 = vld [vmem:[%s3926_s30 + $0x58] ss:$0 sps:$4 sm:$0xff]  }
 0x172   : > { %3011 = vmatmul.mubr.bf16.gmra.mrb[100].mxu1 %v1430_v7  ;;  %3154 = vmatprep.subr.bf16.mxu0 %v3657_v0  ;;  %v4388_v7 = vcombine.low %v4272_v44, %v258_v1 }
 0x173   : > { %3014 = vmatprep.mubr.msk.bf16.mxu1 %vm3658_vm0, %v3657_v0  ;;  %3099 = vmatpush3.bf16.msra.mxu1 %v3420_v9 }
 0x174   : > { %3067 = vmatmul.mubr.bf16.gmra.mrb[100].mxu0 %v1434_v29  ;;  %3100 = vmatprep.subr.bf16.mxu1 %v3657_v0  ;;  %v1646_v21 = vrot.slane %v4388_v7, 2 }
 0x175   : > { %3070 = vmatprep.mubr.msk.bf16.mxu0 %vm3658_vm0, %v3657_v0  ;;  %3155 = vmatpush3.bf16.msra.mxu0 %v3426_v41  ;;  %v1648_v41 = vrot.slane %v4405_v19, 2 }
 0x176   : > { %3156 = vmatprep.subr.bf16.mxu0 %v3657_v0  ;;  %v1647_v34 = vsel %vm1423_vm4, %v1439_v61, %v1646_v21 }
 0x177   : > { %3101 = vmatpush3.bf16.msra.mxu1 %v3422_v25  ;;  %v1649_v46 = vsel %vm1423_vm4, %v1646_v21, %v1648_v41  ;;  %v1842_v21 = vrot.slane %v3989_v36, 3  ;;  %v2091_v36 = vrot.slane %v4315_v30, 3 }
 0x178   : > { %3102 = vmatprep.subr.bf16.mxu1 %v3657_v0 }
 0x179   : > { %3157 = vmatpush3.bf16.msra.mxu0 %v3429_v2 }
 0x17a   : > { %3015 = vmatmul.mubr.bf16.gmra.mrb[104].mxu1 %v1432_v27 }
 0x17b   : > { %3018 = vmatprep.mubr.msk.bf16.mxu1 %vm3658_vm0, %v3657_v0  ;;  %3103 = vmatpush3.bf16.msra.mxu1 %v3424_v45 }
 0x17c   : > { %3071 = vmatmul.mubr.bf16.gmra.mrb[104].mxu0 %v1436_v37  ;;  %3104 = vmatprep.subr.bf16.mxu1 %v3657_v0 }
 0x17d   : > { %v4360_v38 = vpop.f32.mrb[0].mxu1  ;;  %v4362_v26 = vpop.f32.mrb[0].mxu0  ;;  %3074 = vmatprep.mubr.msk.bf16.mxu0 %vm3658_vm0, %v3657_v0 }
 0x17e   : > { %v2760_v50 = vpop.f32.mrb[1].mxu1  ;;  %v2744_v55 = vpop.f32.mrb[1].mxu0 }
 0x17f   : > { %v4367_v57 = vpop.f32.mrb[2].mxu1  ;;  %v4369_v40 = vpop.f32.mrb[2].mxu0  ;;  %3105 = vmatpush3.bf16.msra.mxu1 %v3428_v22  ;;  %v1441_v50 = vrot.slane %v4281_v15, 2 }
 0x180   : > { %v2761_v58 = vpop.f32.mrb[3].mxu1  ;;  %v2745_v59 = vpop.f32.mrb[3].mxu0 }
 0x181   : > { %v3434_v58 = vld [vmem:[%s3926_s30 + $0x10] sm:$0xff]   ;;  %v1442_v1 = vsel %vm1423_vm4, %v1439_v61, %v1441_v50  ;;  %v1849_v50 = vrot.slane %v3945_v11, 3  ;;  %v2093_v11 = vrot.slane %v4328_v8, 3 }
 0x182   : > { %3019 = vmatmul.mubr.bf16.gmra.mrb[108].mxu1 %v1434_v29  ;;  %v2088_v59 = vrot.slane %v3434_v58, 3 }
 0x183   : > { %3022 = vmatprep.mubr.msk.bf16.mxu1 %vm3658_vm0, %v3657_v0  ;;  %v2094_v8 = vsel %vm2087_vm5, %v2091_v36, %v2093_v11 }
 0x184   : > { %3075 = vmatmul.mubr.bf16.gmra.mrb[108].mxu0 %v1438_v6 }
 0x185   : > { %v4374_v60 = vpop.f32.mrb[4].mxu1  ;;  %v4376_v56 = vpop.f32.mrb[4].mxu0  ;;  %3078 = vmatprep.mubr.msk.bf16.mxu0 %vm3658_vm0, %v3657_v0 }
 0x186   : > { %v2764_v49 = vpop.f32.mrb[5].mxu1  ;;  %v2748_v63 = vpop.f32.mrb[5].mxu0 }
 0x187   : > { %v4382_v3 = vpop.f32.mrb[6].mxu1  ;;  %v4384_v39 = vpop.f32.mrb[6].mxu0 }
 0x188   : > { %v2765_v54 = vpop.f32.mrb[7].mxu1  ;;  %v2749_v5 = vpop.f32.mrb[7].mxu0 }
 0x18a   : > { %3023 = vmatmul.mubr.bf16.gmra.mrb[112].mxu1 %v1436_v37 }
 0x18b   : > { %3026 = vmatprep.mubr.msk.bf16.mxu1 %vm3658_vm0, %v3657_v0 }
 0x18c   : > { %3079 = vmatmul.mubr.bf16.gmra.mrb[112].mxu0 %v1440_v10 }
 0x18d   : > { %v4392_v16 = vpop.f32.mrb[8].mxu1  ;;  %v4394_v17 = vpop.f32.mrb[8].mxu0  ;;  %3082 = vmatprep.mubr.msk.bf16.mxu0 %vm3658_vm0, %v3657_v0 }
 0x18e   : > { %v2768_v23 = vpop.f32.mrb[9].mxu1  ;;  %v2752_v24 = vpop.f32.mrb[9].mxu0 }
 0x18f   : > { %v4399_v27 = vpop.f32.mrb[10].mxu1  ;;  %v4401_v44 = vpop.f32.mrb[10].mxu0  ;;  %v1844_v23 = vrot.slane %v4058_v13, 2  ;;  %v1845_v24 = vrot.slane %v4012_v48, 3 }
 0x190   : > { %v2769_v20 = vpop.f32.mrb[11].mxu1  ;;  %v2753_v28 = vpop.f32.mrb[11].mxu0 }
 0x192   : > { %3027 = vmatmul.mubr.bf16.gmra.mrb[116].mxu1 %v1438_v6  ;;  %v3435_v6 = vld [vmem:[%s3926_s30 + $0x18] sm:$0xff]  }
 0x193   : > { %3030 = vmatprep.mubr.msk.bf16.mxu1 %vm3658_vm0, %v3657_v0  ;;  %v2089_v49 = vrot.slane %v3435_v6, 3 }
 0x194   : > { %3083 = vmatmul.mubr.bf16.gmra.mrb[116].mxu0 %v1647_v34 }
 0x195   : > { %v4409_v9 = vpop.f32.mrb[12].mxu1  ;;  %v4411_v29 = vpop.f32.mrb[12].mxu0  ;;  %3086 = vmatprep.mubr.msk.bf16.mxu0 %vm3658_vm0, %v3657_v0  ;;  %v2090_v41 = vsel %vm2087_vm5, %v2088_v59, %v2089_v49  ;;  %v2092_v30 = vsel %vm2087_vm5, %v2089_v49, %v2091_v36 }
 0x196   : > { %v2772_v25 = vpop.f32.mrb[13].mxu1  ;;  %v2756_v62 = vpop.f32.mrb[13].mxu0 }
 0x197   : > { %v4416_v2 = vpop.f32.mrb[14].mxu1  ;;  %v4418_v45 = vpop.f32.mrb[14].mxu0  ;;  %v1846_v25 = vor.u32 %v1845_v24, %v1844_v23  ;;  %v1852_v24 = vrot.slane %v3981_v32, 2 }
 0x198   : > { %v2773_v37 = vpop.f32.mrb[15].mxu1  ;;  %v2757_v22 = vpop.f32.mrb[15].mxu0 }
 0x19a   : > { %3031 = vmatmul.mubr.bf16.gmra.mrb[120].mxu1 %v1440_v10  ;;  %v1841_v10 = vrot.slane %v4023_v53, 2 }
 0x19b   : > { %3034 = vmatprep.mubr.msk.bf16.mxu1 %vm3658_vm0, %v3657_v0 }
 0x19c   : > { %3087 = vmatmul.mubr.bf16.gmra.mrb[120].mxu0 %v1649_v46  ;;  %v1843_v61 = vor.u32 %v1842_v21, %v1841_v10  ;;  %v1848_v46 = vrot.slane %v3958_v18, 2 }
 0x19d   : > { %v4424_v55 = vpop.f32.mrb[16].mxu1  ;;  %3158 = vmatprep.mubr.msk.bf16.mxu0 %vm3658_vm0, %v3657_v0 }
 0x19e   : > { %v2776_v63 = vpop.f32.mrb[17].mxu1  ;;  %v870_v54 = vpop.f32.mrb[16].mxu0  ;;  %v1847_v37 = vsel %vm1840_vm6, %v1843_v61, %v1846_v25  ;;  %v1850_v10 = vor.u32 %v1849_v50, %v1848_v46  ;;  %v1857_v46 = vrot.slane %v3986_v35, 3  ;;  %v3436_v35 = vld [vmem:[%s3926_s30 + $0x38] sm:$0xff]  }
 0x19f   : > { %v4431_v5 = vpop.f32.mrb[18].mxu1  ;;  %v2848_v15 = vpop.f32.mrb[17].mxu0 }
 0x1a0   : > { %v2777_v20 = vpop.f32.mrb[19].mxu1  ;;  %v873_v28 = vpop.f32.mrb[18].mxu0  ;;  %v1851_v49 = vsel %vm1840_vm6, %v1846_v25, %v1850_v10 }
 0x1a1   : > { %v2849_v34 = vpop.f32.mrb[19].mxu0  ;;  %v1853_v20 = vrot.slane %v3952_v14, 3  ;;  %v2095_v14 = vrot.slane %v4341_v33, 3 }
 0x1a2   : > { %3035 = vmatmul.mubr.bf16.gmra.mrb[124].mxu1 %v1442_v1 }
 0x1a3   : > { %3106 = vmatprep.mubr.msk.bf16.mxu1 %vm3658_vm0, %v3657_v0  ;;  %v1854_v25 = vor.u32 %v1853_v20, %v1852_v24  ;;  %v2096_v33 = vsel %vm2087_vm5, %v2093_v11, %v2095_v14 }
 0x1a4   : > { %3159 = vmatmul.mubr.bf16.vlgmr.msra.gmra.mrb[124].mxu0 %v2090_v41 }
 0x1a5   : > { %v671_v53 = vpop.f32.mrb[20].mxu1  ;;  %3162 = vmatprep.mubr.msk.bf16.mxu0 %vm3658_vm0, %v3657_v0  ;;  %v1855_v36 = vsel %vm1840_vm6, %v1850_v10, %v1854_v25 }
 0x1a6   : > { %v672_v48 = vadd.f32 %v671_v53, %v4362_v26  ;;  %v2796_v13 = vpop.f32.mrb[21].mxu1 }
 0x1a7   : > { %v674_v62 = vpop.f32.mrb[22].mxu1  ;;  %v878_v22 = vpop.f32.mrb[20].mxu0 }
 0x1a8   : > { %v4447_v58 = vadd.f32 %v870_v54, %v672_v48  ;;  %v675_v59 = vadd.f32 %v674_v62, %v4369_v40  ;;  %v2797_v6 = vpop.f32.mrb[23].mxu1  ;;  %v2852_v63 = vpop.f32.mrb[21].mxu0 }
 0x1a9   : > { %v881_v1 = vpop.f32.mrb[22].mxu0 }
 0x1aa   : > { %v4451_v15 = vadd.f32 %v873_v28, %v675_v59  ;;  %3107 = vmatmul.mubr.bf16.vlgmr.msra.gmra.mrb[128].mxu1 %v1847_v37  ;;  %v2853_v26 = vpop.f32.mrb[23].mxu0 }
 0x1ab   : > { %3110 = vmatprep.mubr.msk.bf16.mxu1 %vm3658_vm0, %v3657_v0 }
 0x1ac   : > { %3163 = vmatmul.mubr.bf16.gmra.mrb[128].mxu0 %v2092_v30 }
 0x1ad   : > { %v679_v18 = vpop.f32.mrb[24].mxu1  ;;  %3166 = vmatprep.mubr.msk.bf16.mxu0 %vm3658_vm0, %v3657_v0 }
 0x1ae   : > { %v680_v40 = vadd.f32 %v679_v18, %v4376_v56  ;;  %v2800_v54 = vpop.f32.mrb[25].mxu1 }
 0x1af   : > { %v682_v21 = vpop.f32.mrb[26].mxu1  ;;  %v886_v23 = vpop.f32.mrb[24].mxu0 }
 0x1b0   : > { %v4462_v28 = vadd.f32 %v878_v22, %v680_v40  ;;  %v683_v34 = vadd.f32 %v682_v21, %v4384_v39  ;;  %v2801_v41 = vpop.f32.mrb[27].mxu1  ;;  %v2856_v61 = vpop.f32.mrb[25].mxu0  ;;  %v1856_v22 = vrot.slane %v4020_v52, 2  ;;  %v1860_v21 = vrot.slane %v4050_v4, 2 }
 0x1b1   : > { %v889_v53 = vpop.f32.mrb[26].mxu0 }
 0x1b2   : > { %v4466_v48 = vadd.f32 %v881_v1, %v683_v34  ;;  %3111 = vmatmul.mubr.bf16.gmra.mrb[132].mxu1 %v1851_v49  ;;  %v2857_v56 = vpop.f32.mrb[27].mxu0  ;;  %v1858_v52 = vor.u32 %v1857_v46, %v1856_v22  ;;  %v1861_v49 = vrot.slane %v4009_v47, 3  ;;  %v3437_v47 = vld [vmem:[%s3926_s30 + $0x40] sm:$0xff]  }
 0x1b3   : > { %3114 = vmatprep.mubr.msk.bf16.mxu1 %vm3658_vm0, %v3657_v0 }
 0x1b4   : > { %3167 = vmatmul.mubr.bf16.gmra.mrb[132].mxu0 %v2094_v8  ;;  %v1859_v11 = vsel %vm1840_vm6, %v1854_v25, %v1858_v52  ;;  %v1862_v4 = vor.u32 %v1861_v49, %v1860_v21 }
 0x1b5   : > { %v687_v32 = vpop.f32.mrb[28].mxu1  ;;  %3170 = vmatprep.mubr.msk.bf16.mxu0 %vm3658_vm0, %v3657_v0 }
 0x1b6   : > { %v688_v39 = vadd.f32 %v687_v32, %v4394_v17  ;;  %v2804_v13 = vpop.f32.mrb[29].mxu1 }
 0x1b7   : > { %v690_v62 = vpop.f32.mrb[30].mxu1  ;;  %v894_v37 = vpop.f32.mrb[28].mxu0  ;;  %v1864_v13 = vrot.slane %v4076_v31, 2 }
 0x1b8   : > { %v4477_v50 = vadd.f32 %v886_v23, %v688_v39  ;;  %v691_v59 = vadd.f32 %v690_v62, %v4401_v44  ;;  %v2805_v6 = vpop.f32.mrb[31].mxu1  ;;  %v2860_v63 = vpop.f32.mrb[29].mxu0  ;;  %v2097_v44 = vrot.slane %v3436_v35, 3  ;;  %v1865_v62 = vrot.slane %v4055_v12, 3 }
 0x1b9   : > { %v897_v1 = vpop.f32.mrb[30].mxu0  ;;  %v2101_v12 = vrot.slane %v4094_v51, 3  ;;  %v1868_v35 = vrot.slane %v1209_v42, 2  ;;  %v1873_v51 = vshrl.u32 %v4388_v7, 16 }
 0x1ba   : > { %v4481_v17 = vadd.f32 %v889_v53, %v691_v59  ;;  %3115 = vmatmul.mubr.bf16.gmra.mrb[136].mxu1 %v1855_v36  ;;  %v2861_v30 = vpop.f32.mrb[31].mxu0  ;;  %v2098_v61 = vsel %vm2087_vm5, %v2095_v14, %v2097_v44  ;;  %v1863_v14 = vsel %vm1840_vm6, %v1858_v52, %v1862_v4 }
 0x1bb   : > { %3118 = vmatprep.mubr.msk.bf16.mxu1 %vm3658_vm0, %v3657_v0 }
 0x1bc   : > { %3171 = vmatmul.mubr.bf16.gmra.mrb[136].mxu0 %v2096_v33 }
 0x1bd   : > { %v695_v26 = vpop.f32.mrb[32].mxu1  ;;  %3174 = vmatprep.mubr.msk.bf16.mxu0 %vm3658_vm0, %v3657_v0 }
 0x1be   : > { %v696_v10 = vadd.f32 %v695_v26, %v4411_v29  ;;  %v2808_v18 = vpop.f32.mrb[33].mxu1 }
 0x1bf   : > { %v698_v40 = vpop.f32.mrb[34].mxu1  ;;  %v902_v54 = vpop.f32.mrb[32].mxu0 }
 0x1c0   : > { %v4492_v23 = vadd.f32 %v894_v37, %v696_v10  ;;  %v699_v24 = vadd.f32 %v698_v40, %v4418_v45  ;;  %v2809_v20 = vpop.f32.mrb[35].mxu1  ;;  %v2864_v34 = vpop.f32.mrb[33].mxu0  ;;  %v2099_v45 = vrot.slane %v3437_v47, 3 }
 0x1c1   : > { %v905_v41 = vpop.f32.mrb[34].mxu0 }
 0x1c2   : > { %v4496_v29 = vadd.f32 %v897_v1, %v699_v24  ;;  %3119 = vmatmul.mubr.bf16.gmra.mrb[140].mxu1 %v1859_v11  ;;  %v2865_v53 = vpop.f32.mrb[35].mxu0  ;;  %v2100_v6 = vsel %vm2087_vm5, %v2097_v44, %v2099_v45  ;;  %v1866_v1 = vor.u32 %v1865_v62, %v1864_v13  ;;  %v1869_v44 = vrot.slane %v1212_v43, 3 }
 0x1c3   : > { %3122 = vmatprep.mubr.msk.bf16.mxu1 %vm3658_vm0, %v3657_v0  ;;  %v1876_v43 = vshll.u32 %v4388_v7, 16  ;;  %v1882_v13 = vshrl.u32 %v4405_v19, 16  ;;  %v1885_v62 = vshll.u32 %v4405_v19, 16 }
 0x1c4   : > { %3175 = vmatmul.mubr.bf16.gmra.mrb[140].mxu0 %v2098_v61  ;;  %v1867_v52 = vsel %vm1840_vm6, %v1862_v4, %v1866_v1  ;;  %v1870_v42 = vor.u32 %v1869_v44, %v1868_v35  ;;  %v1875_v4 = vrot.slane %v1873_v51, 2 }
 0x1c5   : > { %v703_v8 = vpop.f32.mrb[36].mxu1  ;;  %3178 = vmatprep.mubr.msk.bf16.mxu0 %vm3658_vm0, %v3657_v0 }
 0x1c6   : > { %v704_v56 = vadd.f32 %v703_v8, %v4360_v38  ;;  %v2812_v25 = vpop.f32.mrb[37].mxu1  ;;  %v1871_v61 = vsel %vm1840_vm6, %v1866_v1, %v1870_v42  ;;  %v1878_v8 = vrot.slane %v1876_v43, 3  ;;  %v1884_v1 = vrot.slane %v1882_v13, 2 }
 0x1c7   : > { %v706_v32 = vpop.f32.mrb[38].mxu1  ;;  %v910_v39 = vpop.f32.mrb[36].mxu0 }
 0x1c8   : > { %v4507_v36 = vadd.f32 %v902_v54, %v704_v56  ;;  %v707_v37 = vadd.f32 %v706_v32, %v4367_v57  ;;  %v2813_v22 = vpop.f32.mrb[39].mxu1  ;;  %v2868_v46 = vpop.f32.mrb[37].mxu0 }
 0x1c9   : > { %v913_v59 = vpop.f32.mrb[38].mxu0 }
 0x1ca   : > { %v4511_v63 = vadd.f32 %v905_v41, %v707_v37  ;;  %3123 = vmatmul.mubr.bf16.gmra.mrb[144].mxu1 %v1863_v14  ;;  %v2869_v38 = vpop.f32.mrb[39].mxu0 }
 0x1cb   : > { %3126 = vmatprep.mubr.msk.bf16.mxu1 %vm3658_vm0, %v3657_v0 }
 0x1cc   : > { %3179 = vmatmul.mubr.bf16.gmra.mrb[144].mxu0 %v2100_v6 }
 0x1cd   : > { %v711_v31 = vpop.f32.mrb[40].mxu1  ;;  %3182 = vmatprep.mubr.msk.bf16.mxu0 %vm3658_vm0, %v3657_v0 }
 0x1ce   : > { %v712_v57 = vadd.f32 %v711_v31, %v4374_v60  ;;  %v2816_v33 = vpop.f32.mrb[41].mxu1  ;;  %v2102_v60 = vsel %vm2087_vm5, %v2099_v45, %v2101_v12  ;;  %v1887_v31 = vrot.slane %v1885_v62, 3 }
 0x1cf   : > { %v714_v30 = vpop.f32.mrb[42].mxu1  ;;  %v918_v26 = vpop.f32.mrb[40].mxu0 }
 0x1d0   : > { %v4524_v10 = vadd.f32 %v910_v39, %v712_v57  ;;  %v715_v18 = vadd.f32 %v714_v30, %v4382_v3  ;;  %v2817_v40 = vpop.f32.mrb[43].mxu1  ;;  %v2872_v11 = vpop.f32.mrb[41].mxu0  ;;  %v2103_v3 = vrot.slane %v4388_v7, 3 }
 0x1d1   : > { %v921_v54 = vpop.f32.mrb[42].mxu0 }
 0x1d2   : > { %v4528_v21 = vadd.f32 %v913_v59, %v715_v18  ;;  %3127 = vmatmul.mubr.bf16.gmra.mrb[148].mxu1 %v1867_v52  ;;  %v2873_v49 = vpop.f32.mrb[43].mxu0  ;;  %v2104_v14 = vsel %vm2087_vm5, %v2101_v12, %v2103_v3 }
 0x1d3   : > { %3130 = vmatprep.mubr.msk.bf16.mxu1 %vm3658_vm0, %v3657_v0 }
 0x1d4   : > { %3183 = vmatmul.mubr.bf16.gmra.mrb[148].mxu0 %v2102_v60 }
 0x1d5   : > { %v719_v24 = vpop.f32.mrb[44].mxu1  ;;  %3186 = vmatprep.mubr.msk.bf16.mxu0 %vm3658_vm0, %v3657_v0 }
 0x1d6   : > { %v720_v20 = vadd.f32 %v719_v24, %v4392_v16  ;;  %v2820_v34 = vpop.f32.mrb[45].mxu1  ;;  %v1879_v16 = vor.u32 %v1878_v8, %v1875_v4 }
 0x1d7   : > { %v722_v41 = vpop.f32.mrb[46].mxu1  ;;  %v926_v53 = vpop.f32.mrb[44].mxu0 }
 0x1d8   : > { %v4539_v47 = vadd.f32 %v918_v26, %v720_v20  ;;  %v723_v45 = vadd.f32 %v722_v41, %v4399_v27  ;;  %v2821_v56 = vpop.f32.mrb[47].mxu1  ;;  %v2876_v25 = vpop.f32.mrb[45].mxu0  ;;  %v2105_v27 = vrot.slane %v4405_v19, 3  ;;  %v1880_v6 = vsel %vm1840_vm6, %v1870_v42, %v1879_v16 }
 0x1d9   : > { %v929_v32 = vpop.f32.mrb[46].mxu0 }
 0x1da   : > { %v4543_v39 = vadd.f32 %v921_v54, %v723_v45  ;;  %3131 = vmatmul.mubr.bf16.gmra.mrb[152].mxu1 %v1871_v61  ;;  %v2877_v7 = vpop.f32.mrb[47].mxu0  ;;  %v2106_v26 = vsel %vm2087_vm5, %v2103_v3, %v2105_v27 }
 0x1db   : > { %3134 = vmatprep.mubr.msk.bf16.mxu1 %vm3658_vm0, %v3657_v0 }
 0x1dc   : > { %3187 = vmatmul.mubr.bf16.gmra.mrb[152].mxu0 %v2104_v14 }
 0x1dd   : > { %v727_v37 = vpop.f32.mrb[48].mxu1  ;;  %3190 = vmatprep.mubr.msk.bf16.mxu0 %vm3658_vm0, %v3657_v0 }
 0x1de   : > { %v728_v22 = vadd.f32 %v727_v37, %v4409_v9  ;;  %v2824_v46 = vpop.f32.mrb[49].mxu1  ;;  %v1888_v9 = vor.u32 %v1887_v31, %v1884_v1 }
 0x1df   : > { %v730_v59 = vpop.f32.mrb[50].mxu1  ;;  %v934_v38 = vpop.f32.mrb[48].mxu0 }
 0x1e0   : > { %v4554_v12 = vadd.f32 %v926_v53, %v728_v22  ;;  %v731_v57 = vadd.f32 %v730_v59, %v4416_v2  ;;  %v2825_v33 = vpop.f32.mrb[51].mxu1  ;;  %v2880_v30 = vpop.f32.mrb[49].mxu0  ;;  %v1889_v2 = vsel %vm1840_vm6, %v1879_v16, %v1888_v9 }
 0x1e1   : > { %v937_v52 = vpop.f32.mrb[50].mxu0 }
 0x1e2   : > { %v4558_v35 = vadd.f32 %v929_v32, %v731_v57  ;;  %3135 = vmatmul.mubr.bf16.gmra.mrb[156].mxu1 %v1880_v6  ;;  %v2881_v19 = vpop.f32.mrb[51].mxu0 }
 0x1e3   : > { %3138 = vmatprep.mubr.msk.bf16.mxu1 %vm3658_vm0, %v3657_v0 }
 0x1e4   : > { %3191 = vmatmul.mubr.bf16.gmra.mrb[156].mxu0 %v2106_v26 }
 0x1e5   : > { %v735_v44 = vpop.f32.mrb[52].mxu1 }
 0x1e6   : > { %v736_v18 = vadd.f32 %v735_v44, %v4424_v55  ;;  %v2828_v40 = vpop.f32.mrb[53].mxu1 }
 0x1e7   : > { %v738_v11 = vpop.f32.mrb[54].mxu1  ;;  %v1317_v54 = vpop.f32.mrb[52].mxu0 }
 0x1e8   : > { %v4564_v60 = vadd.f32 %v934_v38, %v736_v18  ;;  %v739_v49 = vadd.f32 %v738_v11, %v4431_v5  ;;  %v2829_v42 = vpop.f32.mrb[55].mxu1  ;;  %v2952_v51 = vpop.f32.mrb[53].mxu0 }
 0x1e9   : > { %v1320_v43 = vpop.f32.mrb[54].mxu0 }
 0x1ea   : > { %v4567_v24 = vadd.f32 %v937_v52, %v739_v49  ;;  %3139 = vmatmul.mubr.bf16.gmra.mrb[160].mxu1 %v1889_v2  ;;  %v2953_v0 = vpop.f32.mrb[55].mxu0 }
 0x1ed   : > { %v1070_v3 = vpop.f32.mrb[56].mxu1 }
 0x1ee   : > { %v1141_v20 = vadd.f32 %v1070_v3, %v4447_v58  ;;  %v2900_v55 = vpop.f32.mrb[57].mxu1 }
 0x1ef   : > { %v1073_v34 = vpop.f32.mrb[58].mxu1  ;;  %v1325_v41 = vpop.f32.mrb[56].mxu0 }
 0x1f0   : > { %v4570_v61 = vadd.f32 %v1317_v54, %v1141_v20  ;;  %v1142_v53 = vadd.f32 %v1073_v34, %v4451_v15  ;;  %v2901_v4 = vpop.f32.mrb[59].mxu1  ;;  %v2956_v8 = vpop.f32.mrb[57].mxu0 }
 0x1f1   : > { %v1328_v5 = vpop.f32.mrb[58].mxu0 }
 0x1f2   : > { %v4573_v45 = vadd.f32 %v1320_v43, %v1142_v53  ;;  %v2957_v56 = vpop.f32.mrb[59].mxu0 }
 0x1f5   : > { %v1078_v25 = vpop.f32.mrb[60].mxu1 }
 0x1f6   : > { %v1143_v32 = vadd.f32 %v1078_v25, %v4462_v28  ;;  %v2904_v14 = vpop.f32.mrb[61].mxu1 }
 0x1f7   : > { %v1081_v7 = vpop.f32.mrb[62].mxu1  ;;  %v1333_v16 = vpop.f32.mrb[60].mxu0 }
 0x1f8   : > { %v4576_v58 = vadd.f32 %v1325_v41, %v1143_v32  ;;  %v1144_v13 = vadd.f32 %v1081_v7, %v4466_v48  ;;  %v2905_v62 = vpop.f32.mrb[63].mxu1  ;;  %v2960_v37 = vpop.f32.mrb[61].mxu0 }
 0x1f9   : > { %v1336_v27 = vpop.f32.mrb[62].mxu0 }
 0x1fa   : > { %v4579_v15 = vadd.f32 %v1328_v5, %v1144_v13  ;;  %v2961_v22 = vpop.f32.mrb[63].mxu0 }
 0x1fd   : > { %v1086_v46 = vpop.f32.mrb[64].mxu1 }
 0x1fe   : > { %v1145_v59 = vadd.f32 %v1086_v46, %v4477_v50  ;;  %v2908_v6 = vpop.f32.mrb[65].mxu1 }
 0x1ff   : > { %v1089_v38 = vpop.f32.mrb[66].mxu1  ;;  %v1341_v1 = vpop.f32.mrb[64].mxu0 }
 0x200   : > { %v4582_v28 = vadd.f32 %v1333_v16, %v1145_v59  ;;  %v1146_v31 = vadd.f32 %v1089_v38, %v4481_v17  ;;  %v2909_v57 = vpop.f32.mrb[67].mxu1  ;;  %v2964_v33 = vpop.f32.mrb[65].mxu0 }
 0x201   : > { %v1344_v30 = vpop.f32.mrb[66].mxu0 }
 0x202   : > { %v4585_v48 = vadd.f32 %v1336_v27, %v1146_v31  ;;  %v2965_v52 = vpop.f32.mrb[67].mxu0 }
 0x205   : > { %v1094_v26 = vpop.f32.mrb[68].mxu1 }
 0x206   : > { %v1147_v19 = vadd.f32 %v1094_v26, %v4492_v23  ;;  %v2912_v9 = vpop.f32.mrb[69].mxu1 }
 0x207   : > { %v1097_v44 = vpop.f32.mrb[70].mxu1  ;;  %v1349_v18 = vpop.f32.mrb[68].mxu0 }
 0x208   : > { %v4588_v50 = vadd.f32 %v1341_v1, %v1147_v19  ;;  %v1148_v40 = vadd.f32 %v1097_v44, %v4496_v29  ;;  %v2913_v11 = vpop.f32.mrb[71].mxu1  ;;  %v2968_v2 = vpop.f32.mrb[69].mxu0 }
 0x209   : > { %v1352_v54 = vpop.f32.mrb[70].mxu0 }
 0x20a   : > { %v4591_v17 = vadd.f32 %v1344_v30, %v1148_v40  ;;  %v2969_v49 = vpop.f32.mrb[71].mxu0 }
 0x20d   : > { %v1102_v42 = vpop.f32.mrb[72].mxu1 }
 0x20e   : > { %v1149_v51 = vadd.f32 %v1102_v42, %v4507_v36  ;;  %v2916_v43 = vpop.f32.mrb[73].mxu1 }
 0x20f   : > { %v1105_v0 = vpop.f32.mrb[74].mxu1  ;;  %v1357_v3 = vpop.f32.mrb[72].mxu0 }
 0x210   : > { %v4594_v23 = vadd.f32 %v1349_v18, %v1149_v51  ;;  %v1150_v20 = vadd.f32 %v1105_v0, %v4511_v63  ;;  %v2917_v55 = vpop.f32.mrb[75].mxu1  ;;  %v2972_v34 = vpop.f32.mrb[73].mxu0 }
 0x211   : > { %v1360_v41 = vpop.f32.mrb[74].mxu0 }
 0x212   : > { %v4597_v29 = vadd.f32 %v1352_v54, %v1150_v20  ;;  %v2973_v53 = vpop.f32.mrb[75].mxu0 }
 0x215   : > { %v1110_v4 = vpop.f32.mrb[76].mxu1 }
 0x216   : > { %v1151_v8 = vadd.f32 %v1110_v4, %v4524_v10  ;;  %v2920_v5 = vpop.f32.mrb[77].mxu1 }
 0x217   : > { %v1113_v56 = vpop.f32.mrb[78].mxu1  ;;  %v1365_v25 = vpop.f32.mrb[76].mxu0 }
 0x218   : > { %v4600_v36 = vadd.f32 %v1357_v3, %v1151_v8  ;;  %v1152_v32 = vadd.f32 %v1113_v56, %v4528_v21  ;;  %v2921_v14 = vpop.f32.mrb[79].mxu1  ;;  %v2976_v7 = vpop.f32.mrb[77].mxu0 }
 0x219   : > { %v1368_v16 = vpop.f32.mrb[78].mxu0 }
 0x21a   : > { %v4603_v63 = vadd.f32 %v1360_v41, %v1152_v32  ;;  %v2977_v13 = vpop.f32.mrb[79].mxu0 }
 0x21d   : > { %v1118_v62 = vpop.f32.mrb[80].mxu1 }
 0x21e   : > { %v1153_v37 = vadd.f32 %v1118_v62, %v4539_v47  ;;  %v2924_v27 = vpop.f32.mrb[81].mxu1 }
 0x21f   : > { %v1121_v22 = vpop.f32.mrb[82].mxu1  ;;  %v1373_v46 = vpop.f32.mrb[80].mxu0 }
 0x220   : > { %v4606_v10 = vadd.f32 %v1365_v25, %v1153_v37  ;;  %v1154_v59 = vadd.f32 %v1121_v22, %v4543_v39  ;;  %v2925_v6 = vpop.f32.mrb[83].mxu1  ;;  %v2980_v38 = vpop.f32.mrb[81].mxu0 }
 0x221   : > { %v1376_v1 = vpop.f32.mrb[82].mxu0 }
 0x222   : > { %v4609_v21 = vadd.f32 %v1368_v16, %v1154_v59  ;;  %v2981_v31 = vpop.f32.mrb[83].mxu0 }
 0x225   : > { %v1126_v57 = vpop.f32.mrb[84].mxu1 }
 0x226   : > { %v1155_v33 = vadd.f32 %v1126_v57, %v4554_v12  ;;  %v2928_v30 = vpop.f32.mrb[85].mxu1 }
 0x227   : > { %v1129_v52 = vpop.f32.mrb[86].mxu1  ;;  %v1381_v26 = vpop.f32.mrb[84].mxu0 }
 0x228   : > { %v4612_v47 = vadd.f32 %v1373_v46, %v1155_v33  ;;  %v1156_v19 = vadd.f32 %v1129_v52, %v4558_v35  ;;  %v2929_v9 = vpop.f32.mrb[87].mxu1  ;;  %v2984_v44 = vpop.f32.mrb[85].mxu0 }
 0x229   : > { %v1384_v18 = vpop.f32.mrb[86].mxu0 }
 0x22a   : > { %v4615_v39 = vadd.f32 %v1376_v1, %v1156_v19  ;;  %v2985_v40 = vpop.f32.mrb[87].mxu0 }
 0x22d   : > { %v1134_v11 = vpop.f32.mrb[88].mxu1 }
 0x22e   : > { %v1157_v2 = vadd.f32 %v1134_v11, %v4564_v60  ;;  %v2932_v54 = vpop.f32.mrb[89].mxu1 }
 0x22f   : > { %v1137_v49 = vpop.f32.mrb[90].mxu1  ;;  %v1734_v42 = vpop.f32.mrb[88].mxu0 }
 0x230   : > { %v4618_v12 = vadd.f32 %v1381_v26, %v1157_v2  ;;  %v1158_v51 = vadd.f32 %v1137_v49, %v4567_v24  ;;  %v2933_v43 = vpop.f32.mrb[91].mxu1  ;;  %v3056_v0 = vpop.f32.mrb[89].mxu0 }
 0x231   : > { %v1737_v3 = vpop.f32.mrb[90].mxu0 }
 0x232   : > { %v4621_v35 = vadd.f32 %v1384_v18, %v1158_v51  ;;  %v3057_v20 = vpop.f32.mrb[91].mxu0 }
 0x235   : > { %v1534_v55 = vpop.f32.mrb[92].mxu1 }
 0x236   : > { %v1605_v34 = vadd.f32 %v1534_v55, %v4570_v61  ;;  %v3004_v41 = vpop.f32.mrb[93].mxu1 }
 0x237   : > { %v1537_v53 = vpop.f32.mrb[94].mxu1  ;;  %v1742_v4 = vpop.f32.mrb[92].mxu0 }
 0x238   : > { %v4624_v60 = vadd.f32 %v1734_v42, %v1605_v34  ;;  %v1606_v8 = vadd.f32 %v1537_v53, %v4573_v45  ;;  %v3005_v5 = vpop.f32.mrb[95].mxu1  ;;  %v3060_v56 = vpop.f32.mrb[93].mxu0 }
 0x239   : > { %v1745_v25 = vpop.f32.mrb[94].mxu0 }
 0x23a   : > { %v4627_v24 = vadd.f32 %v1737_v3, %v1606_v8  ;;  %v3061_v32 = vpop.f32.mrb[95].mxu0 }
 0x23d   : > { %v1542_v14 = vpop.f32.mrb[96].mxu1 }
 0x23e   : > { %v1607_v7 = vadd.f32 %v1542_v14, %v4576_v58  ;;  %v3008_v16 = vpop.f32.mrb[97].mxu1 }
 0x23f   : > { %v1545_v13 = vpop.f32.mrb[98].mxu1  ;;  %v1750_v62 = vpop.f32.mrb[96].mxu0 }
 0x240   : > { %v4630_v61 = vadd.f32 %v1742_v4, %v1607_v7  ;;  %v1608_v37 = vadd.f32 %v1545_v13, %v4579_v15  ;;  %v3009_v27 = vpop.f32.mrb[99].mxu1  ;;  %v3064_v22 = vpop.f32.mrb[97].mxu0 }
 0x241   : > { %v1753_v46 = vpop.f32.mrb[98].mxu0 }
 0x242   : > { %v4633_v45 = vadd.f32 %v1745_v25, %v1608_v37  ;;  %v3065_v59 = vpop.f32.mrb[99].mxu0 }
 0x245   : > { %v1550_v6 = vpop.f32.mrb[100].mxu1 }
 0x246   : > { %v1609_v38 = vadd.f32 %v1550_v6, %v4582_v28  ;;  %v3012_v1 = vpop.f32.mrb[101].mxu1 }
 0x247   : > { %v1553_v31 = vpop.f32.mrb[102].mxu1  ;;  %v1758_v57 = vpop.f32.mrb[100].mxu0 }
 0x248   : > { %v4636_v58 = vadd.f32 %v1750_v62, %v1609_v38  ;;  %v1610_v33 = vadd.f32 %v1553_v31, %v4585_v48  ;;  %v3013_v30 = vpop.f32.mrb[103].mxu1  ;;  %v3068_v52 = vpop.f32.mrb[101].mxu0 }
 0x249   : > { %v1761_v26 = vpop.f32.mrb[102].mxu0 }
 0x24a   : > { %v4639_v15 = vadd.f32 %v1753_v46, %v1610_v33  ;;  %v3069_v19 = vpop.f32.mrb[103].mxu0 }
 0x24d   : > { %v1558_v9 = vpop.f32.mrb[104].mxu1 }
 0x24e   : > { %v1611_v44 = vadd.f32 %v1558_v9, %v4588_v50  ;;  %v3016_v18 = vpop.f32.mrb[105].mxu1 }
 0x24f   : > { %v1561_v40 = vpop.f32.mrb[106].mxu1  ;;  %v1766_v11 = vpop.f32.mrb[104].mxu0 }
 0x250   : > { %v4642_v28 = vadd.f32 %v1758_v57, %v1611_v44  ;;  %v1612_v2 = vadd.f32 %v1561_v40, %v4591_v17  ;;  %v3017_v54 = vpop.f32.mrb[107].mxu1  ;;  %v3072_v49 = vpop.f32.mrb[105].mxu0 }
 0x251   : > { %v1769_v42 = vpop.f32.mrb[106].mxu0 }
 0x252   : > { %v4645_v48 = vadd.f32 %v1761_v26, %v1612_v2  ;;  %v3073_v51 = vpop.f32.mrb[107].mxu0 }
 0x255   : > { %v1566_v43 = vpop.f32.mrb[108].mxu1 }
 0x256   : > { %v1613_v0 = vadd.f32 %v1566_v43, %v4594_v23  ;;  %v3020_v3 = vpop.f32.mrb[109].mxu1 }
 0x257   : > { %v1569_v20 = vpop.f32.mrb[110].mxu1  ;;  %v1774_v55 = vpop.f32.mrb[108].mxu0 }
 0x258   : > { %v4648_v50 = vadd.f32 %v1766_v11, %v1613_v0  ;;  %v1614_v34 = vadd.f32 %v1569_v20, %v4597_v29  ;;  %v3021_v41 = vpop.f32.mrb[111].mxu1  ;;  %v3076_v53 = vpop.f32.mrb[109].mxu0 }
 0x259   : > { %v1777_v4 = vpop.f32.mrb[110].mxu0 }
 0x25a   : > { %v4651_v17 = vadd.f32 %v1769_v42, %v1614_v34  ;;  %v3077_v8 = vpop.f32.mrb[111].mxu0 }
 0x25d   : > { %v1574_v5 = vpop.f32.mrb[112].mxu1 }
 0x25e   : > { %v1615_v56 = vadd.f32 %v1574_v5, %v4600_v36  ;;  %v3024_v25 = vpop.f32.mrb[113].mxu1 }
 0x25f   : > { %v1577_v32 = vpop.f32.mrb[114].mxu1  ;;  %v1782_v14 = vpop.f32.mrb[112].mxu0 }
 0x260   : > { %v4654_v23 = vadd.f32 %v1774_v55, %v1615_v56  ;;  %v1616_v7 = vadd.f32 %v1577_v32, %v4603_v63  ;;  %v3025_v16 = vpop.f32.mrb[115].mxu1  ;;  %v3080_v13 = vpop.f32.mrb[113].mxu0 }
 0x261   : > { %v1785_v62 = vpop.f32.mrb[114].mxu0 }
 0x262   : > { %v4657_v29 = vadd.f32 %v1777_v4, %v1616_v7  ;;  %v3081_v37 = vpop.f32.mrb[115].mxu0 }
 0x265   : > { %v1582_v27 = vpop.f32.mrb[116].mxu1 }
 0x266   : > { %v1617_v22 = vadd.f32 %v1582_v27, %v4606_v10  ;;  %v3028_v46 = vpop.f32.mrb[117].mxu1 }
 0x267   : > { %v1585_v59 = vpop.f32.mrb[118].mxu1  ;;  %v1790_v6 = vpop.f32.mrb[116].mxu0 }
 0x268   : > { %v4660_v36 = vadd.f32 %v1782_v14, %v1617_v22  ;;  %v1618_v38 = vadd.f32 %v1585_v59, %v4609_v21  ;;  %v3029_v1 = vpop.f32.mrb[119].mxu1  ;;  %v3084_v31 = vpop.f32.mrb[117].mxu0 }
 0x269   : > { %v1793_v57 = vpop.f32.mrb[118].mxu0 }
 0x26a   : > { %v4663_v63 = vadd.f32 %v1785_v62, %v1618_v38  ;;  %v3085_v33 = vpop.f32.mrb[119].mxu0 }
 0x26d   : > { %v1590_v30 = vpop.f32.mrb[120].mxu1 }
 0x26e   : > { %v1619_v52 = vadd.f32 %v1590_v30, %v4612_v47  ;;  %v3032_v26 = vpop.f32.mrb[121].mxu1 }
 0x26f   : > { %v1593_v19 = vpop.f32.mrb[122].mxu1  ;;  %v1798_v9 = vpop.f32.mrb[120].mxu0 }
 0x270   : > { %v4666_v10 = vadd.f32 %v1790_v6, %v1619_v52  ;;  %v1620_v44 = vadd.f32 %v1593_v19, %v4615_v39  ;;  %v3033_v18 = vpop.f32.mrb[123].mxu1  ;;  %v3088_v40 = vpop.f32.mrb[121].mxu0 }
 0x271   : > { %v1801_v21 = vpop.f32.mrb[122].mxu0 }
 0x272   : > { %v4669_v11 = vadd.f32 %v1793_v57, %v1620_v44  ;;  %v3089_v2 = vpop.f32.mrb[123].mxu0 }
 0x275   : > { %v1598_v54 = vpop.f32.mrb[124].mxu1 }
 0x276   : > { %v1621_v49 = vadd.f32 %v1598_v54, %v4618_v12  ;;  %v3036_v42 = vpop.f32.mrb[125].mxu1  ;;  %v4681_v12 = vld [vmem:[#allocation7] ss:$0 sm:$0xff] }
 0x277   : > { %v1601_v47 = vpop.f32.mrb[126].mxu1  ;;  %v2198_v51 = vpop.f32.mrb[124].mxu0 }
 0x278   : > { %v4672_v43 = vadd.f32 %v1798_v9, %v1621_v49  ;;  %v1622_v0 = vadd.f32 %v1601_v47, %v4621_v35  ;;  %v3037_v3 = vpop.f32.mrb[127].mxu1  ;;  %v3160_v39 = vpop.f32.mrb[125].mxu0 }
 0x279   : > { %v2201_v20 = vpop.f32.mrb[126].mxu0 }
 0x27a   : > { %v4675_v55 = vadd.f32 %v1801_v21, %v1622_v0  ;;  %v3161_v34 = vpop.f32.mrb[127].mxu0 }
 0x27d   : > { %v1981_v41 = vpop.f32.mrb[128].mxu1 }
 0x27e   : > { %v2052_v53 = vadd.f32 %v1981_v41, %v4624_v60  ;;  %v3108_v4 = vpop.f32.mrb[129].mxu1 }
 0x27f   : > { %v1984_v8 = vpop.f32.mrb[130].mxu1  ;;  %v2206_v5 = vpop.f32.mrb[128].mxu0 }
 0x280   : > { %v2269_v56 = vadd.f32 %v2198_v51, %v2052_v53  ;;  %v2053_v35 = vadd.f32 %v1984_v8, %v4627_v24  ;;  %v3109_v25 = vpop.f32.mrb[131].mxu1  ;;  %v3164_v32 = vpop.f32.mrb[129].mxu0 }
 0x281   : > { %v2209_v14 = vpop.f32.mrb[130].mxu0 }
 0x282   : > { %v2294_v7 = vadd.f32 %v4681_v12, %v2269_v56  ;;  %v2270_v16 = vadd.f32 %v2201_v20, %v2053_v35  ;;  %v3165_v13 = vpop.f32.mrb[131].mxu0 }
 0x284   : > { %v2312_v62 = vmax.f32 %v2294_v7, 0.0  ;;  %v2295_v60 = vadd.f32 %v4681_v12, %v2270_v16 }
 0x285   : > { %v1989_v37 = vpop.f32.mrb[132].mxu1 }
 0x286   : > { %2330 = vst [vmem:[%s4686_s24] sm:$0xff] %v2312_v62  ;;  %v2313_v27 = vmax.f32 %v2295_v60, 0.0  ;;  %v2054_v22 = vadd.f32 %v1989_v37, %v4630_v61  ;;  %v3112_v24 = vpop.f32.mrb[133].mxu1 }
 0x287   : > { %v1992_v46 = vpop.f32.mrb[134].mxu1  ;;  %v2214_v59 = vpop.f32.mrb[132].mxu0 }
 0x288   : > { %2331 = vst [vmem:[%s4686_s24 + $0x8] sm:$0xff] %v2313_v27  ;;  %v2271_v6 = vadd.f32 %v2206_v5, %v2054_v22  ;;  %v2055_v38 = vadd.f32 %v1992_v46, %v4633_v45  ;;  %v3113_v1 = vpop.f32.mrb[135].mxu1  ;;  %v3168_v31 = vpop.f32.mrb[133].mxu0 }
 0x289   : > { %v2217_v57 = vpop.f32.mrb[134].mxu0 }
 0x28a   : > { %v2296_v33 = vadd.f32 %v4681_v12, %v2271_v6  ;;  %v2272_v30 = vadd.f32 %v2209_v14, %v2055_v38  ;;  %v3169_v52 = vpop.f32.mrb[135].mxu0 }
 0x28c   : > { %v2314_v26 = vmax.f32 %v2296_v33, 0.0  ;;  %v2297_v19 = vadd.f32 %v4681_v12, %v2272_v30 }
 0x28d   : > { %v1997_v61 = vpop.f32.mrb[136].mxu1 }
 0x28e   : > { %2332 = vst [vmem:[%s4686_s24 + $0x10] sm:$0xff] %v2314_v26  ;;  %v2315_v9 = vmax.f32 %v2297_v19, 0.0  ;;  %v2056_v44 = vadd.f32 %v1997_v61, %v4636_v58  ;;  %v3116_v18 = vpop.f32.mrb[137].mxu1 }
 0x28f   : > { %v2000_v40 = vpop.f32.mrb[138].mxu1  ;;  %v2222_v45 = vpop.f32.mrb[136].mxu0 }
 0x290   : > { %2333 = vst [vmem:[%s4686_s24 + $0x18] sm:$0xff] %v2315_v9  ;;  %v2273_v21 = vadd.f32 %v2214_v59, %v2056_v44  ;;  %v2057_v2 = vadd.f32 %v2000_v40, %v4639_v15  ;;  %v3117_v54 = vpop.f32.mrb[139].mxu1  ;;  %v3172_v49 = vpop.f32.mrb[137].mxu0 }
 0x291   : > { %v2225_v42 = vpop.f32.mrb[138].mxu0 }
 0x292   : > { %v2298_v47 = vadd.f32 %v4681_v12, %v2273_v21  ;;  %v2274_v51 = vadd.f32 %v2217_v57, %v2057_v2  ;;  %v3173_v0 = vpop.f32.mrb[139].mxu0 }
 0x294   : > { %v2316_v3 = vmax.f32 %v2298_v47, 0.0  ;;  %v2299_v39 = vadd.f32 %v4681_v12, %v2274_v51 }
 0x295   : > { %v2005_v58 = vpop.f32.mrb[140].mxu1 }
 0x296   : > { %2334 = vst [vmem:[%s4686_s24 + $0x20] sm:$0xff] %v2316_v3  ;;  %v2317_v20 = vmax.f32 %v2299_v39, 0.0  ;;  %v2058_v34 = vadd.f32 %v2005_v58, %v4642_v28  ;;  %v3120_v41 = vpop.f32.mrb[141].mxu1 }
 0x297   : > { %v2008_v53 = vpop.f32.mrb[142].mxu1  ;;  %v2230_v15 = vpop.f32.mrb[140].mxu0 }
 0x298   : > { %2335 = vst [vmem:[%s4686_s24 + $0x28] sm:$0xff] %v2317_v20  ;;  %v2275_v4 = vadd.f32 %v2222_v45, %v2058_v34  ;;  %v2059_v8 = vadd.f32 %v2008_v53, %v4645_v48  ;;  %v3121_v5 = vpop.f32.mrb[143].mxu1  ;;  %v3176_v56 = vpop.f32.mrb[141].mxu0 }
 0x299   : > { %v2233_v35 = vpop.f32.mrb[142].mxu0 }
 0x29a   : > { %v2300_v25 = vadd.f32 %v4681_v12, %v2275_v4  ;;  %v2276_v32 = vadd.f32 %v2225_v42, %v2059_v8  ;;  %v3177_v14 = vpop.f32.mrb[143].mxu0 }
 0x29c   : > { %v2318_v7 = vmax.f32 %v2300_v25, 0.0  ;;  %v2301_v16 = vadd.f32 %v4681_v12, %v2276_v32 }
 0x29d   : > { %v2013_v28 = vpop.f32.mrb[144].mxu1 }
 0x29e   : > { %2336 = vst [vmem:[%s4686_s24 + $0x30] sm:$0xff] %v2318_v7  ;;  %v2319_v13 = vmax.f32 %v2301_v16, 0.0  ;;  %v2060_v62 = vadd.f32 %v2013_v28, %v4648_v50  ;;  %v3124_v60 = vpop.f32.mrb[145].mxu1 }
 0x29f   : > { %v2016_v37 = vpop.f32.mrb[146].mxu1  ;;  %v2238_v48 = vpop.f32.mrb[144].mxu0 }
 0x2a0   : > { %2337 = vst [vmem:[%s4686_s24 + $0x38] sm:$0xff] %v2319_v13  ;;  %v2277_v27 = vadd.f32 %v2230_v15, %v2060_v62  ;;  %v2061_v22 = vadd.f32 %v2016_v37, %v4651_v17  ;;  %v3125_v24 = vpop.f32.mrb[147].mxu1  ;;  %v3180_v46 = vpop.f32.mrb[145].mxu0 }
 0x2a1   : > { %v2241_v59 = vpop.f32.mrb[146].mxu0 }
 0x2a2   : > { %v2302_v6 = vadd.f32 %v4681_v12, %v2277_v27  ;;  %v2278_v38 = vadd.f32 %v2233_v35, %v2061_v22  ;;  %v3181_v1 = vpop.f32.mrb[147].mxu0 }
 0x2a4   : > { %v2320_v31 = vmax.f32 %v2302_v6, 0.0  ;;  %v2303_v57 = vadd.f32 %v4681_v12, %v2278_v38 }
 0x2a5   : > { %v2021_v50 = vpop.f32.mrb[148].mxu1 }
 0x2a6   : > { %2338 = vst [vmem:[%s4686_s24 + $0x40] sm:$0xff] %v2320_v31  ;;  %v2321_v33 = vmax.f32 %v2303_v57, 0.0  ;;  %v2062_v30 = vadd.f32 %v2021_v50, %v4654_v23  ;;  %v3128_v52 = vpop.f32.mrb[149].mxu1 }
 0x2a7   : > { %v2024_v26 = vpop.f32.mrb[150].mxu1  ;;  %v2246_v17 = vpop.f32.mrb[148].mxu0 }
 0x2a8   : > { %2339 = vst [vmem:[%s4686_s24 + $0x48] sm:$0xff] %v2321_v33  ;;  %v2279_v19 = vadd.f32 %v2238_v48, %v2062_v30  ;;  %v2063_v61 = vadd.f32 %v2024_v26, %v4657_v29  ;;  %v3129_v9 = vpop.f32.mrb[151].mxu1  ;;  %v3184_v44 = vpop.f32.mrb[149].mxu0 }
 0x2a9   : > { %v2249_v18 = vpop.f32.mrb[150].mxu0 }
 0x2aa   : > { %v2304_v40 = vadd.f32 %v4681_v12, %v2279_v19  ;;  %v2280_v45 = vadd.f32 %v2241_v59, %v2063_v61  ;;  %v3185_v21 = vpop.f32.mrb[151].mxu0 }
 0x2ac   : > { %v2322_v2 = vmax.f32 %v2304_v40, 0.0  ;;  %v2305_v54 = vadd.f32 %v4681_v12, %v2280_v45 }
 0x2ad   : > { %v2029_v23 = vpop.f32.mrb[152].mxu1 }
 0x2ae   : > { %2340 = vst [vmem:[%s4686_s24 + $0x50] sm:$0xff] %v2322_v2  ;;  %v2323_v49 = vmax.f32 %v2305_v54, 0.0  ;;  %v2064_v42 = vadd.f32 %v2029_v23, %v4660_v36  ;;  %v3132_v47 = vpop.f32.mrb[153].mxu1 }
 0x2af   : > { %v2032_v51 = vpop.f32.mrb[154].mxu1  ;;  %v2254_v29 = vpop.f32.mrb[152].mxu0 }
 0x2b0   : > { %2341 = vst [vmem:[%s4686_s24 + $0x58] sm:$0xff] %v2323_v49  ;;  %v2281_v0 = vadd.f32 %v2246_v17, %v2064_v42  ;;  %v2065_v3 = vadd.f32 %v2032_v51, %v4663_v63  ;;  %v3133_v39 = vpop.f32.mrb[155].mxu1  ;;  %v3188_v58 = vpop.f32.mrb[153].mxu0 }
 0x2b1   : > { %v2257_v20 = vpop.f32.mrb[154].mxu0 }
 0x2b2   : > { %v2306_v34 = vadd.f32 %v4681_v12, %v2281_v0  ;;  %v2282_v41 = vadd.f32 %v2249_v18, %v2065_v3  ;;  %v3189_v53 = vpop.f32.mrb[155].mxu0 }
 0x2b4   : > { %v2324_v15 = vmax.f32 %v2306_v34, 0.0  ;;  %v2307_v4 = vadd.f32 %v4681_v12, %v2282_v41 }
 0x2b5   : > { %v2037_v36 = vpop.f32.mrb[156].mxu1 }
 0x2b6   : > { %2342 = vst [vmem:[%s4686_s24 + $0x60] sm:$0xff] %v2324_v15  ;;  %v2325_v8 = vmax.f32 %v2307_v4, 0.0  ;;  %v2066_v5 = vadd.f32 %v2037_v36, %v4666_v10  ;;  %v3136_v56 = vpop.f32.mrb[157].mxu1 }
 0x2b7   : > { %v2040_v63 = vpop.f32.mrb[158].mxu1  ;;  %v2262_v35 = vpop.f32.mrb[156].mxu0 }
 0x2b8   : > { %2343 = vst [vmem:[%s4686_s24 + $0x68] sm:$0xff] %v2325_v8  ;;  %v2283_v25 = vadd.f32 %v2254_v29, %v2066_v5  ;;  %v2067_v32 = vadd.f32 %v2040_v63, %v4669_v11  ;;  %v3137_v14 = vpop.f32.mrb[159].mxu1  ;;  %v3192_v7 = vpop.f32.mrb[157].mxu0 }
 0x2b9   : > { %v2265_v16 = vpop.f32.mrb[158].mxu0 }
 0x2ba   : > { %v2308_v28 = vadd.f32 %v4681_v12, %v2283_v25  ;;  %v2284_v13 = vadd.f32 %v2257_v20, %v2067_v32  ;;  %v3193_v62 = vpop.f32.mrb[159].mxu0 }
 0x2bc   : > { %v2326_v60 = vmax.f32 %v2308_v28, 0.0  ;;  %v2309_v10 = vadd.f32 %v4681_v12, %v2284_v13 }
 0x2bd   : > { %v2045_v37 = vpop.f32.mrb[160].mxu1 }
 0x2be   : > { %2344 = vst [vmem:[%s4686_s24 + $0x70] sm:$0xff] %v2326_v60  ;;  %v2327_v48 = vmax.f32 %v2309_v10, 0.0  ;;  %v2068_v27 = vadd.f32 %v2045_v37, %v4672_v43  ;;  %v3140_v11 = vpop.f32.mrb[161].mxu1 }
 0x2bf   : > { %v2048_v22 = vpop.f32.mrb[162].mxu1 }
 0x2c0   : > { %2345 = vst [vmem:[%s4686_s24 + $0x78] sm:$0xff] %v2327_v48  ;;  %v2285_v24 = vadd.f32 %v2262_v35, %v2068_v27  ;;  %v2069_v46 = vadd.f32 %v2048_v22, %v4675_v55  ;;  %v3141_v59 = vpop.f32.mrb[163].mxu1 }
 0x2c2   : > { %v2310_v6 = vadd.f32 %v4681_v12, %v2285_v24  ;;  %v2286_v38 = vadd.f32 %v2265_v16, %v2069_v46 }
 0x2c4   : > { %v2328_v1 = vmax.f32 %v2310_v6, 0.0  ;;  %v2311_v43 = vadd.f32 %v4681_v12, %v2286_v38 }
 0x2c6   : > { %2346 = vst [vmem:[%s4686_s24 + $0x80] sm:$0xff] %v2328_v1  ;;  %v2329_v55 = vmax.f32 %v2311_v43, 0.0 }
 0x2c8   : > { %2347 = vst [vmem:[%s4686_s24 + $0x88] sm:$0xff] %v2329_v55 }
 0x2c9   : > { %3537 = shalt.err (!%p3534_p5)
}
 0x2ca   : > { %s3538_s27 = scalar_lea.hbm %s4742_s1, 2304  ;;  %s3542_s29 = scalar_lea.hbm %s4814_s3, 9216 }
 0x2cb   : > { %p3539_p8 = scmp.ne.s32.totalorder %s4742_s1, %s3538_s27  ;;  %p3543_p6 = scmp.lt.u32.totalorder %s4742_s1, %s4814_s3 }
 0x2cc   : > { %p3544_p10 = scmp.lt.u32.totalorder %s3542_s29, %s3538_s27  ;;  %p3546_p4 = scmp.lt.u32.totalorder %s3538_s27, %s4742_s1 }
 0x2cd   : > { %p3540_p12 = pnand %p3539_p8, %p4848_p3 }
 0x2ce   : > { %p3545_p1 = por %p3544_p10, %p3543_p6 }
 0x2cf   : > { %p3541_p2 = pneg %p3540_p12 }
 0x2d0   : > { %p3547_p7 = por %p3546_p4, %p3545_p1 }
 0x2d2   : > { %p3548_p13 = pnand %p3547_p7, %p3541_p2 }
 0x2d4   : > { %3551 = shalt.err (!%p3548_p13)
}
 0x2d5   : > { %s3660_s8 = smov 128   ;;  %s3661_s7 = smov 8  }
 0x2d6   : > { %3225 = dma.vmem_to_hbm [thread:$0]  (%p4848_p3), %s4744_s19, 2304, %s4742_s1, %s4750_s11, %s3660_s8, %s3660_s8, %s3661_s7  }
 0x2d7 PF: > { %s4849_s5 = sld [smem:[#allocation12_spill]]  ;;  %s4850_s18 = sld [smem:[#allocation14_spill]] }
 0x2d8   : > { %p3247_p9 = scmp.ge.s32.totalorder %s3650_s22, 2 }
 0x2dd   : > { %s2379_s12 = sand.u32 1, %s4849_s5   ;;  %p4851_p11 = scmp.ne.s32.totalorder %s4850_s18, 0 }
 0x2de   : > { %s2380_s9 = scalar_lea.sflag [#allocation4], %s2379_s12 }
 0x2df   : > { %p3239_p0 = pnand %p3247_p9, %p4851_p11 }
 0x2e1   : > { %3605 = dma.done.wait (!%p3239_p0), %s2380_s9, 2304  }
 0x2e2   : > { %3607 = vsyncadd (!%p3239_p0), %s2380_s9, 4294964992  ;;  %s20_s22 = sadd.s32 1, %s3650_s22   ;;  %s4852_s18 = sld [smem:[#allocation13_spill]] }
 0x2e3   : > { %p17_p5 = scmp.ge.s32.totalorder %s20_s22, 6   ;;  %s4853_s20 = sld [smem:[#allocation15_spill]] }
 0x2e4   : > { %s4854_s28 = smov %s4868_s15  ;;  %s4855_s12 = smov %s3614_s13 }
 0x2e5   : > { %s4856_s13 = smov %s3618_s14  ;;  %s4857_s14 = smov %s3861_s2 }
 0x2e6   : > { %s4858_s15 = smov %s3626_s16  ;;  %s4859_s16 = smov %s3630_s17 }
 0x2e7   : > { %s4860_s17 = smov %s3856_s10  ;;  %s4861_s19 = smov %s3646_s21 }
 0x2e8   : > { %s4862_s21 = smov %s4854_s28  ;;  %19 = sbr.rel (!%p17_p5) target bundleno = 13 (0xd), region = 94 }
 0x2ef   :  { %2385 = vsyncpa [#allocation3], 1 }
 0x2f0   :  { %2387 = vsyncpa [#allocation3 + $0x1], 1 }
 0x2f1   :  { %2388 = vsyncpa [#allocation6], 1 }
 0x2f2   :  { %2389 = vsyncpa [#allocation4], 1 }
 0x2f3   :  { %2391 = vsyncpa [#allocation4 + $0x1], 1 }

</bundles_post_ra>
